<compile_context>
chip_gen: v5e
topology: v5e:2x2
jax: 0.10.0
libtpu: 0.0.40
codegen_flags: <defaults>
</compile_context>

<pallas_src>
import jax
import jax.numpy as jnp
from jax.experimental import pallas as pl
from jax.experimental.pallas import tpu as pltpu

C_PAD = 128                      # lane-pad for channels / FC dims (v5e-friendly 128 granularity)
MXU_DTYPE = jnp.bfloat16         # GEMM operand dtype (f32 accumulation)


# ----------------------------- Pallas kernels ------------------------------ #

def _conv_relu_pool_kernel(taps_ref, w_ref, b_ref, o_ref):
    """Fused conv (im2col GEMM) + bias + ReLU + 2x2/2 max-pool for one image.

    taps_ref: (1, 4, P, K)  im2col rows of the 4 pool taps; P = PH*PW pooled
                            positions, K = KH*KW*IC.
    w_ref:    (K, C_PAD)    conv weight, output channels zero-padded to 128.
    b_ref:    (1, C_PAD)    f32 bias (zero-padded).
    o_ref:    (1, P, C_PAD) pooled activations (lane-dense store).
    """
    w = w_ref[...]
    y = jnp.dot(taps_ref[0, 0], w, preferred_element_type=jnp.float32)
    for t in range(1, 4):
        y = jnp.maximum(
            y, jnp.dot(taps_ref[0, t], w, preferred_element_type=jnp.float32))
    # max(conv) + b == max(conv + b) and ReLU is monotone, so pooling before
    # the bias add / ReLU is exact.
    o_ref[0] = jnp.maximum(y + b_ref[...], 0.0).astype(o_ref.dtype)


def _fc_fused_kernel(x_ref, w1_ref, b1_ref, w2_ref, b2_ref, w3_ref, b3_ref,
                     o_ref):
    """relu(relu(x@w1+b1)@w2+b2)@w3+b3 in one kernel; everything VMEM-resident."""
    h = jnp.dot(x_ref[...], w1_ref[...], preferred_element_type=jnp.float32)
    h = jnp.maximum(h + b1_ref[...], 0.0)
    h = jnp.dot(h.astype(w2_ref.dtype), w2_ref[...],
                preferred_element_type=jnp.float32)
    h = jnp.maximum(h + b2_ref[...], 0.0)
    y = jnp.dot(h.astype(w3_ref.dtype), w3_ref[...],
                preferred_element_type=jnp.float32)
    o_ref[...] = (y + b3_ref[...]).astype(o_ref.dtype)


# ----------------------------- Pallas wrappers ------------------------------ #

def conv_relu_pool(taps, w, b):
    """taps: (N, 4, P, K) -> pooled activations (N, P, C_PAD)."""
    n, t, p, k = taps.shape
    oc = w.shape[1]
    return pl.pallas_call(
        _conv_relu_pool_kernel,
        out_shape=jax.ShapeDtypeStruct((n, p, oc), taps.dtype),
        grid_spec=pltpu.PrefetchScalarGridSpec(
            num_scalar_prefetch=0,
            grid=(n,),                                        # one image / step
            in_specs=[
                pl.BlockSpec((1, t, p, k), lambda i: (i, 0, 0, 0)),
                pl.BlockSpec((k, oc), lambda i: (0, 0)),      # resident weight
                pl.BlockSpec((1, oc), lambda i: (0, 0)),      # resident bias
            ],
            out_specs=pl.BlockSpec((1, p, oc), lambda i: (i, 0, 0)),
        ),
        compiler_params=pltpu.CompilerParams(
            dimension_semantics=("parallel",)),               # megacore on v7x
    )(taps, w, b)


_VMEM = pl.BlockSpec(memory_space=pltpu.MemorySpace.VMEM)


def fc_fused(x, p):
    """x: (N, 25*C_PAD) -> logits (N, C_PAD); only columns [:10] are meaningful."""
    n = x.shape[0]
    # Weights total < 1 MiB; single ungridded VMEM-resident block is fine for any
    # reasonable batch (grid over rows only needed for extremely large N).
    return pl.pallas_call(
        _fc_fused_kernel,
        out_shape=jax.ShapeDtypeStruct((n, C_PAD), jnp.float32),
        in_specs=[_VMEM] * 7,
        out_specs=_VMEM,
    )(x, p["fc1_w"], p["fc1_b"], p["fc2_w"], p["fc2_b"],
      p["fc3_w"], p["fc3_b"])


# ------------------------------ JAX-side glue ------------------------------- #

def im2col_pool_taps(x, kh, kw):
    """NHWC x -> (N, 4, PH*PW, KH*KW*C): im2col rows of the four 2x2-pool taps.

    Column order within K is (kh, kw, c); the 4 taps are (dy, dx) in {0,1}^2.
    """
    n, h, w, c = x.shape
    oh, ow = h - kh + 1, w - kw + 1
    ph, pw = oh // 2, ow // 2
    taps = []
    for dy in range(2):
        for dx in range(2):
            cols = []
            for i in range(kh):
                for j in range(kw):
                    patch = x[:, dy + i::2, dx + j::2, :][:, :ph, :pw, :]
                    cols.append(patch)                        # (N, PH, PW, C)
            tap = jnp.stack(cols, axis=-2)                    # (N, PH, PW, KH*KW, C)
            taps.append(tap.reshape(n, ph * pw, kh * kw * c))
    return jnp.stack(taps, axis=1), ph, pw                    # (N, 4, PH*PW, K)


# ------------------------------- Parameters --------------------------------- #

def init_params(key):
    def uniform(k, shape, fan_in):
        bound = 1.0 / jnp.sqrt(float(fan_in))
        return jax.random.uniform(k, shape, jnp.float32, -bound, bound)

    ks = jax.random.split(key, 10)
    return {
        "conv1_w": uniform(ks[0], (6, 1, 5, 5), 1 * 5 * 5),
        "conv1_b": uniform(ks[1], (6,), 1 * 5 * 5),
        "conv2_w": uniform(ks[2], (16, 6, 5, 5), 6 * 5 * 5),
        "conv2_b": uniform(ks[3], (16,), 6 * 5 * 5),
        "fc1_w":   uniform(ks[4], (120, 400), 400),
        "fc1_b":   uniform(ks[5], (120,), 400),
        "fc2_w":   uniform(ks[6], (84, 120), 120),
        "fc2_b":   uniform(ks[7], (84,), 120),
        "fc3_w":   uniform(ks[8], (10, 84), 84),
        "fc3_b":   uniform(ks[9], (10,), 84),
    }


def _pad_last(a, size):
    return jnp.pad(a, [(0, 0)] * (a.ndim - 1) + [(0, size - a.shape[-1])])


def prepare_params(p):
    """PyTorch-layout params -> kernel layout.  Done once, outside the hot path."""
    def conv_w(w):                        # (OC, IC, KH, KW) -> (KH*KW*IC, C_PAD)
        oc, ic, kh, kw = w.shape
        w = jnp.transpose(w, (2, 3, 1, 0)).reshape(kh * kw * ic, oc)
        return _pad_last(w, C_PAD).astype(MXU_DTYPE)

    def bias(b):
        return _pad_last(b.reshape(1, -1), C_PAD).astype(jnp.float32)

    # fc1 consumes the conv2 output directly in (h, w, c_pad) order; rows for the
    # zero-padded channels are zero, so no channel-slice glue is needed before it.
    w1 = p["fc1_w"].reshape(120, 16, 5, 5).transpose(2, 3, 1, 0)    # (5,5,16,120)
    w1 = jnp.pad(w1, ((0, 0), (0, 0), (0, C_PAD - 16), (0, C_PAD - 120)))
    w1 = w1.reshape(5 * 5 * C_PAD, C_PAD).astype(MXU_DTYPE)
    w2 = jnp.pad(p["fc2_w"].T, ((0, C_PAD - 120), (0, C_PAD - 84))).astype(MXU_DTYPE)
    w3 = jnp.pad(p["fc3_w"].T, ((0, C_PAD - 84), (0, C_PAD - 10))).astype(MXU_DTYPE)
    return {
        "conv1_w": conv_w(p["conv1_w"]), "conv1_b": bias(p["conv1_b"]),
        "conv2_w": conv_w(p["conv2_w"]), "conv2_b": bias(p["conv2_b"]),
        "fc1_w": w1, "fc1_b": bias(p["fc1_b"]),
        "fc2_w": w2, "fc2_b": bias(p["fc2_b"]),
        "fc3_w": w3, "fc3_b": bias(p["fc3_b"]),
    }


# --------------------------------- Forward ----------------------------------- #

@jax.jit
def net_forward(prepped, x_nchw):
    n = x_nchw.shape[0]
    x = jnp.transpose(x_nchw, (0, 2, 3, 1)).astype(MXU_DTYPE)       # NHWC
    # conv1 -> relu -> pool (one fused Pallas kernel)
    taps1, ph1, pw1 = im2col_pool_taps(x, 5, 5)                     # (N,4,196,25)
    a1 = conv_relu_pool(taps1, prepped["conv1_w"], prepped["conv1_b"])
    # conv2 -> relu -> pool
    a1 = a1.reshape(n, ph1, pw1, C_PAD)[..., :6]                    # drop pad ch
    taps2, ph2, pw2 = im2col_pool_taps(a1, 5, 5)                    # (N,4,25,150)
    a2 = conv_relu_pool(taps2, prepped["conv2_w"], prepped["conv2_b"])
    # fc1 -> relu -> fc2 -> relu -> fc3 (one fused Pallas kernel)
    xf = a2.reshape(n, ph2 * pw2 * C_PAD)                           # (N, 3200)
    logits = fc_fused(xf, prepped)                                  # (N, 128)
    return logits[:, :10]


if __name__ == "__main__":
    key = jax.random.PRNGKey(0)
    pkey, xkey = jax.random.split(key)
    params = init_params(pkey)
    prepped = prepare_params(params)
    x = jax.random.normal(xkey, (2, 1, 32, 32), jnp.float32)

    out = net_forward(prepped, x)
    jax.block_until_ready(out)
    assert out.shape == (2, 10), out.shape
    print("KERNEL_OK")
</pallas_src>

<mosaic_0001>
module attributes {stable_mosaic.version = 11 : i64} {
  func.func @_conv_relu_pool_kernel(%arg0: i32, %arg1: memref<1x4x196x25xbf16, #tpu.memory_space<vmem>>, %arg2: memref<25x128xbf16, #tpu.memory_space<vmem>>, %arg3: memref<1x128xf32, #tpu.memory_space<vmem>>, %arg4: memref<1x196x128xbf16, #tpu.memory_space<vmem>>) attributes {dimension_semantics = [#tpu.dimension_semantics<parallel>], iteration_bounds = array<i64: 2>, scalar_prefetch = 0 : i64, scratch_operands = 0 : i64, tpu.core_type = #tpu.core_type<tc>, window_params = [{transform_indices = @transform_0, window_bounds = array<i64: 1, 4, 196, 25>}, {pipeline_mode = #tpu.pipeline_mode<synchronous>, transform_indices = @transform_1, window_bounds = array<i64: 25, 128>}, {pipeline_mode = #tpu.pipeline_mode<synchronous>, transform_indices = @transform_2, window_bounds = array<i64: 1, 128>}, {transform_indices = @transform_3, window_bounds = array<i64: 1, 196, 128>}]} {
    %c0 = arith.constant 0 : index
    %c0_0 = arith.constant 0 : index
    %0 = vector.load %arg2[%c0, %c0_0] : memref<25x128xbf16, #tpu.memory_space<vmem>>, vector<25x128xbf16>
    %c0_1 = arith.constant 0 : index
    %c0_2 = arith.constant 0 : index
    %c0_3 = arith.constant 0 : index
    %c0_4 = arith.constant 0 : index
    %1 = vector.load %arg1[%c0_1, %c0_2, %c0_3, %c0_4] : memref<1x4x196x25xbf16, #tpu.memory_space<vmem>>, vector<1x1x196x25xbf16>
    %2 = vector.shape_cast %1 : vector<1x1x196x25xbf16> to vector<196x25xbf16>
    %cst = arith.constant dense<0.000000e+00> : vector<196x128xf32>
    %3 = tpu.matmul %2, %0, %cst {dimension_numbers = #tpu.dot_dimension_numbers<[1], [0], [0], [1], [0, 0, 1, 1], [], []>} : vector<196x25xbf16>, vector<25x128xbf16>, vector<196x128xf32> -> vector<196x128xf32>
    %c0_5 = arith.constant 0 : index
    %c1 = arith.constant 1 : index
    %c0_6 = arith.constant 0 : index
    %c0_7 = arith.constant 0 : index
    %4 = vector.load %arg1[%c0_5, %c1, %c0_6, %c0_7] : memref<1x4x196x25xbf16, #tpu.memory_space<vmem>>, vector<1x1x196x25xbf16>
    %5 = vector.shape_cast %4 : vector<1x1x196x25xbf16> to vector<196x25xbf16>
    %cst_8 = arith.constant dense<0.000000e+00> : vector<196x128xf32>
    %6 = tpu.matmul %5, %0, %cst_8 {dimension_numbers = #tpu.dot_dimension_numbers<[1], [0], [0], [1], [0, 0, 1, 1], [], []>} : vector<196x25xbf16>, vector<25x128xbf16>, vector<196x128xf32> -> vector<196x128xf32>
    %7 = arith.maximumf %3, %6 : vector<196x128xf32>
    %c0_9 = arith.constant 0 : index
    %c2 = arith.constant 2 : index
    %c0_10 = arith.constant 0 : index
    %c0_11 = arith.constant 0 : index
    %8 = vector.load %arg1[%c0_9, %c2, %c0_10, %c0_11] : memref<1x4x196x25xbf16, #tpu.memory_space<vmem>>, vector<1x1x196x25xbf16>
    %9 = vector.shape_cast %8 : vector<1x1x196x25xbf16> to vector<196x25xbf16>
    %cst_12 = arith.constant dense<0.000000e+00> : vector<196x128xf32>
    %10 = tpu.matmul %9, %0, %cst_12 {dimension_numbers = #tpu.dot_dimension_numbers<[1], [0], [0], [1], [0, 0, 1, 1], [], []>} : vector<196x25xbf16>, vector<25x128xbf16>, vector<196x128xf32> -> vector<196x128xf32>
    %11 = arith.maximumf %7, %10 : vector<196x128xf32>
    %c0_13 = arith.constant 0 : index
    %c3 = arith.constant 3 : index
    %c0_14 = arith.constant 0 : index
    %c0_15 = arith.constant 0 : index
    %12 = vector.load %arg1[%c0_13, %c3, %c0_14, %c0_15] : memref<1x4x196x25xbf16, #tpu.memory_space<vmem>>, vector<1x1x196x25xbf16>
    %13 = vector.shape_cast %12 : vector<1x1x196x25xbf16> to vector<196x25xbf16>
    %cst_16 = arith.constant dense<0.000000e+00> : vector<196x128xf32>
    %14 = tpu.matmul %13, %0, %cst_16 {dimension_numbers = #tpu.dot_dimension_numbers<[1], [0], [0], [1], [0, 0, 1, 1], [], []>} : vector<196x25xbf16>, vector<25x128xbf16>, vector<196x128xf32> -> vector<196x128xf32>
    %15 = arith.maximumf %11, %14 : vector<196x128xf32>
    %c0_17 = arith.constant 0 : index
    %c0_18 = arith.constant 0 : index
    %16 = vector.load %arg3[%c0_17, %c0_18] : memref<1x128xf32, #tpu.memory_space<vmem>>, vector<1x128xf32>
    %17 = vector.broadcast %16 : vector<1x128xf32> to vector<196x128xf32>
    %18 = arith.addf %15, %17 : vector<196x128xf32>
    %cst_19 = arith.constant 0.000000e+00 : f32
    %19 = vector.broadcast %cst_19 : f32 to vector<196x128xf32>
    %20 = arith.maximumf %18, %19 : vector<196x128xf32>
    %21 = arith.truncf %20 : vector<196x128xf32> to vector<196x128xbf16>
    %c0_20 = arith.constant 0 : index
    %c0_21 = arith.constant 0 : index
    %c0_22 = arith.constant 0 : index
    %22 = vector.load %arg4[%c0_20, %c0_21, %c0_22] : memref<1x196x128xbf16, #tpu.memory_space<vmem>>, vector<1x196x128xbf16>
    %23 = vector.shape_cast %22 : vector<1x196x128xbf16> to vector<196x128xbf16>
    %24 = vector.shape_cast %21 : vector<196x128xbf16> to vector<1x196x128xbf16>
    tpu.vector_store %arg4[%c0_20, %c0_21, %c0_22], %24 {strides = array<i32>} : memref<1x196x128xbf16, #tpu.memory_space<vmem>>, vector<1x196x128xbf16>,
    return
  }
  func.func @transform_0(%arg0: i32) -> (i32, i32, i32, i32) {
    %c0_i32 = arith.constant 0 : i32
    %c0_i32_0 = arith.constant 0 : i32
    %c0_i32_1 = arith.constant 0 : i32
    %c0_i32_2 = arith.constant 0 : i32
    return %arg0, %c0_i32, %c0_i32_0, %c0_i32_1 : i32, i32, i32, i32
  }
  func.func @transform_1(%arg0: i32) -> (i32, i32) {
    %c0_i32 = arith.constant 0 : i32
    %c0_i32_0 = arith.constant 0 : i32
    %c0_i32_1 = arith.constant 0 : i32
    return %c0_i32, %c0_i32_0 : i32, i32
  }
  func.func @transform_2(%arg0: i32) -> (i32, i32) {
    %c0_i32 = arith.constant 0 : i32
    %c0_i32_0 = arith.constant 0 : i32
    %c0_i32_1 = arith.constant 0 : i32
    return %c0_i32, %c0_i32_0 : i32, i32
  }
  func.func @transform_3(%arg0: i32) -> (i32, i32, i32) {
    %c0_i32 = arith.constant 0 : i32
    %c0_i32_0 = arith.constant 0 : i32
    %c0_i32_1 = arith.constant 0 : i32
    return %arg0, %c0_i32, %c0_i32_0 : i32, i32, i32
  }
}

module attributes {stable_mosaic.version = 11 : i64} {
  func.func @_conv_relu_pool_kernel(%arg0: i32, %arg1: memref<1x4x25x150xbf16, #tpu.memory_space<vmem>>, %arg2: memref<150x128xbf16, #tpu.memory_space<vmem>>, %arg3: memref<1x128xf32, #tpu.memory_space<vmem>>, %arg4: memref<1x25x128xbf16, #tpu.memory_space<vmem>>) attributes {dimension_semantics = [#tpu.dimension_semantics<parallel>], iteration_bounds = array<i64: 2>, scalar_prefetch = 0 : i64, scratch_operands = 0 : i64, tpu.core_type = #tpu.core_type<tc>, window_params = [{transform_indices = @transform_0, window_bounds = array<i64: 1, 4, 25, 150>}, {pipeline_mode = #tpu.pipeline_mode<synchronous>, transform_indices = @transform_1, window_bounds = array<i64: 150, 128>}, {pipeline_mode = #tpu.pipeline_mode<synchronous>, transform_indices = @transform_2, window_bounds = array<i64: 1, 128>}, {transform_indices = @transform_3, window_bounds = array<i64: 1, 25, 128>}]} {
    %c0 = arith.constant 0 : index
    %c0_0 = arith.constant 0 : index
    %0 = vector.load %arg2[%c0, %c0_0] : memref<150x128xbf16, #tpu.memory_space<vmem>>, vector<150x128xbf16>
    %c0_1 = arith.constant 0 : index
    %c0_2 = arith.constant 0 : index
    %c0_3 = arith.constant 0 : index
    %c0_4 = arith.constant 0 : index
    %1 = vector.load %arg1[%c0_1, %c0_2, %c0_3, %c0_4] : memref<1x4x25x150xbf16, #tpu.memory_space<vmem>>, vector<1x1x25x150xbf16>
    %2 = vector.shape_cast %1 : vector<1x1x25x150xbf16> to vector<25x150xbf16>
    %cst = arith.constant dense<0.000000e+00> : vector<25x128xf32>
    %3 = tpu.matmul %2, %0, %cst {dimension_numbers = #tpu.dot_dimension_numbers<[1], [0], [0], [1], [0, 0, 1, 1], [], []>} : vector<25x150xbf16>, vector<150x128xbf16>, vector<25x128xf32> -> vector<25x128xf32>
    %c0_5 = arith.constant 0 : index
    %c1 = arith.constant 1 : index
    %c0_6 = arith.constant 0 : index
    %c0_7 = arith.constant 0 : index
    %4 = vector.load %arg1[%c0_5, %c1, %c0_6, %c0_7] : memref<1x4x25x150xbf16, #tpu.memory_space<vmem>>, vector<1x1x25x150xbf16>
    %5 = vector.shape_cast %4 : vector<1x1x25x150xbf16> to vector<25x150xbf16>
    %cst_8 = arith.constant dense<0.000000e+00> : vector<25x128xf32>
    %6 = tpu.matmul %5, %0, %cst_8 {dimension_numbers = #tpu.dot_dimension_numbers<[1], [0], [0], [1], [0, 0, 1, 1], [], []>} : vector<25x150xbf16>, vector<150x128xbf16>, vector<25x128xf32> -> vector<25x128xf32>
    %7 = arith.maximumf %3, %6 : vector<25x128xf32>
    %c0_9 = arith.constant 0 : index
    %c2 = arith.constant 2 : index
    %c0_10 = arith.constant 0 : index
    %c0_11 = arith.constant 0 : index
    %8 = vector.load %arg1[%c0_9, %c2, %c0_10, %c0_11] : memref<1x4x25x150xbf16, #tpu.memory_space<vmem>>, vector<1x1x25x150xbf16>
    %9 = vector.shape_cast %8 : vector<1x1x25x150xbf16> to vector<25x150xbf16>
    %cst_12 = arith.constant dense<0.000000e+00> : vector<25x128xf32>
    %10 = tpu.matmul %9, %0, %cst_12 {dimension_numbers = #tpu.dot_dimension_numbers<[1], [0], [0], [1], [0, 0, 1, 1], [], []>} : vector<25x150xbf16>, vector<150x128xbf16>, vector<25x128xf32> -> vector<25x128xf32>
    %11 = arith.maximumf %7, %10 : vector<25x128xf32>
    %c0_13 = arith.constant 0 : index
    %c3 = arith.constant 3 : index
    %c0_14 = arith.constant 0 : index
    %c0_15 = arith.constant 0 : index
    %12 = vector.load %arg1[%c0_13, %c3, %c0_14, %c0_15] : memref<1x4x25x150xbf16, #tpu.memory_space<vmem>>, vector<1x1x25x150xbf16>
    %13 = vector.shape_cast %12 : vector<1x1x25x150xbf16> to vector<25x150xbf16>
    %cst_16 = arith.constant dense<0.000000e+00> : vector<25x128xf32>
    %14 = tpu.matmul %13, %0, %cst_16 {dimension_numbers = #tpu.dot_dimension_numbers<[1], [0], [0], [1], [0, 0, 1, 1], [], []>} : vector<25x150xbf16>, vector<150x128xbf16>, vector<25x128xf32> -> vector<25x128xf32>
    %15 = arith.maximumf %11, %14 : vector<25x128xf32>
    %c0_17 = arith.constant 0 : index
    %c0_18 = arith.constant 0 : index
    %16 = vector.load %arg3[%c0_17, %c0_18] : memref<1x128xf32, #tpu.memory_space<vmem>>, vector<1x128xf32>
    %17 = vector.broadcast %16 : vector<1x128xf32> to vector<25x128xf32>
    %18 = arith.addf %15, %17 : vector<25x128xf32>
    %cst_19 = arith.constant 0.000000e+00 : f32
    %19 = vector.broadcast %cst_19 : f32 to vector<25x128xf32>
    %20 = arith.maximumf %18, %19 : vector<25x128xf32>
    %21 = arith.truncf %20 : vector<25x128xf32> to vector<25x128xbf16>
    %c0_20 = arith.constant 0 : index
    %c0_21 = arith.constant 0 : index
    %c0_22 = arith.constant 0 : index
    %22 = vector.load %arg4[%c0_20, %c0_21, %c0_22] : memref<1x25x128xbf16, #tpu.memory_space<vmem>>, vector<1x25x128xbf16>
    %23 = vector.shape_cast %22 : vector<1x25x128xbf16> to vector<25x128xbf16>
    %24 = vector.shape_cast %21 : vector<25x128xbf16> to vector<1x25x128xbf16>
    tpu.vector_store %arg4[%c0_20, %c0_21, %c0_22], %24 {strides = array<i32>} : memref<1x25x128xbf16, #tpu.memory_space<vmem>>, vector<1x25x128xbf16>,
    return
  }
  func.func @transform_0(%arg0: i32) -> (i32, i32, i32, i32) {
    %c0_i32 = arith.constant 0 : i32
    %c0_i32_0 = arith.constant 0 : i32
    %c0_i32_1 = arith.constant 0 : i32
    %c0_i32_2 = arith.constant 0 : i32
    return %arg0, %c0_i32, %c0_i32_0, %c0_i32_1 : i32, i32, i32, i32
  }
  func.func @transform_1(%arg0: i32) -> (i32, i32) {
    %c0_i32 = arith.constant 0 : i32
    %c0_i32_0 = arith.constant 0 : i32
    %c0_i32_1 = arith.constant 0 : i32
    return %c0_i32, %c0_i32_0 : i32, i32
  }
  func.func @transform_2(%arg0: i32) -> (i32, i32) {
    %c0_i32 = arith.constant 0 : i32
    %c0_i32_0 = arith.constant 0 : i32
    %c0_i32_1 = arith.constant 0 : i32
    return %c0_i32, %c0_i32_0 : i32, i32
  }
  func.func @transform_3(%arg0: i32) -> (i32, i32, i32) {
    %c0_i32 = arith.constant 0 : i32
    %c0_i32_0 = arith.constant 0 : i32
    %c0_i32_1 = arith.constant 0 : i32
    return %arg0, %c0_i32, %c0_i32_0 : i32, i32, i32
  }
}

module attributes {stable_mosaic.version = 11 : i64} {
  func.func @_fc_fused_kernel(%arg0: memref<2x3200xbf16, #tpu.memory_space<vmem>>, %arg1: memref<3200x128xbf16, #tpu.memory_space<vmem>>, %arg2: memref<1x128xf32, #tpu.memory_space<vmem>>, %arg3: memref<128x128xbf16, #tpu.memory_space<vmem>>, %arg4: memref<1x128xf32, #tpu.memory_space<vmem>>, %arg5: memref<128x128xbf16, #tpu.memory_space<vmem>>, %arg6: memref<1x128xf32, #tpu.memory_space<vmem>>, %arg7: memref<2x128xf32, #tpu.memory_space<vmem>>) attributes {dimension_semantics = [], scalar_prefetch = 0 : i64, scratch_operands = 0 : i64, tpu.core_type = #tpu.core_type<tc>} {
    %c0 = arith.constant 0 : index
    %c0_0 = arith.constant 0 : index
    %0 = vector.load %arg0[%c0, %c0_0] : memref<2x3200xbf16, #tpu.memory_space<vmem>>, vector<2x3200xbf16>
    %c0_1 = arith.constant 0 : index
    %c0_2 = arith.constant 0 : index
    %1 = vector.load %arg1[%c0_1, %c0_2] : memref<3200x128xbf16, #tpu.memory_space<vmem>>, vector<3200x128xbf16>
    %cst = arith.constant dense<0.000000e+00> : vector<2x128xf32>
    %2 = tpu.matmul %0, %1, %cst {dimension_numbers = #tpu.dot_dimension_numbers<[1], [0], [0], [1], [0, 0, 1, 1], [], []>} : vector<2x3200xbf16>, vector<3200x128xbf16>, vector<2x128xf32> -> vector<2x128xf32>
    %c0_3 = arith.constant 0 : index
    %c0_4 = arith.constant 0 : index
    %3 = vector.load %arg2[%c0_3, %c0_4] : memref<1x128xf32, #tpu.memory_space<vmem>>, vector<1x128xf32>
    %4 = vector.broadcast %3 : vector<1x128xf32> to vector<2x128xf32>
    %5 = arith.addf %2, %4 : vector<2x128xf32>
    %cst_5 = arith.constant 0.000000e+00 : f32
    %6 = vector.broadcast %cst_5 : f32 to vector<2x128xf32>
    %7 = arith.maximumf %5, %6 : vector<2x128xf32>
    %8 = arith.truncf %7 : vector<2x128xf32> to vector<2x128xbf16>
    %c0_6 = arith.constant 0 : index
    %c0_7 = arith.constant 0 : index
    %9 = vector.load %arg3[%c0_6, %c0_7] : memref<128x128xbf16, #tpu.memory_space<vmem>>, vector<128x128xbf16>
    %cst_8 = arith.constant dense<0.000000e+00> : vector<2x128xf32>
    %10 = tpu.matmul %8, %9, %cst_8 {dimension_numbers = #tpu.dot_dimension_numbers<[1], [0], [0], [1], [0, 0, 1, 1], [], []>} : vector<2x128xbf16>, vector<128x128xbf16>, vector<2x128xf32> -> vector<2x128xf32>
    %c0_9 = arith.constant 0 : index
    %c0_10 = arith.constant 0 : index
    %11 = vector.load %arg4[%c0_9, %c0_10] : memref<1x128xf32, #tpu.memory_space<vmem>>, vector<1x128xf32>
    %12 = vector.broadcast %11 : vector<1x128xf32> to vector<2x128xf32>
    %13 = arith.addf %10, %12 : vector<2x128xf32>
    %cst_11 = arith.constant 0.000000e+00 : f32
    %14 = vector.broadcast %cst_11 : f32 to vector<2x128xf32>
    %15 = arith.maximumf %13, %14 : vector<2x128xf32>
    %16 = arith.truncf %15 : vector<2x128xf32> to vector<2x128xbf16>
    %c0_12 = arith.constant 0 : index
    %c0_13 = arith.constant 0 : index
    %17 = vector.load %arg5[%c0_12, %c0_13] : memref<128x128xbf16, #tpu.memory_space<vmem>>, vector<128x128xbf16>
    %cst_14 = arith.constant dense<0.000000e+00> : vector<2x128xf32>
    %18 = tpu.matmul %16, %17, %cst_14 {dimension_numbers = #tpu.dot_dimension_numbers<[1], [0], [0], [1], [0, 0, 1, 1], [], []>} : vector<2x128xbf16>, vector<128x128xbf16>, vector<2x128xf32> -> vector<2x128xf32>
    %c0_15 = arith.constant 0 : index
    %c0_16 = arith.constant 0 : index
    %19 = vector.load %arg6[%c0_15, %c0_16] : memref<1x128xf32, #tpu.memory_space<vmem>>, vector<1x128xf32>
    %20 = vector.broadcast %19 : vector<1x128xf32> to vector<2x128xf32>
    %21 = arith.addf %18, %20 : vector<2x128xf32>
    %c0_17 = arith.constant 0 : index
    %c0_18 = arith.constant 0 : index
    %22 = vector.load %arg7[%c0_17, %c0_18] : memref<2x128xf32, #tpu.memory_space<vmem>>, vector<2x128xf32>
    tpu.vector_store %arg7[%c0_17, %c0_18], %21 {strides = array<i32>} : memref<2x128xf32, #tpu.memory_space<vmem>>, vector<2x128xf32>,
    return
  }
}

</mosaic_0001>

<bundles_post_ra>
// kernel: net_forward.3
= control target key start
LH: loop header
LB: loop body
LE: loop exit
PB: predicated region body
PF: predicated region fallthrough
CT: control target
= control target key end

     0   :  { %s1730_s12 = smov 0   ;;  %s1911_s0 = inlined_call_operand.vmem [shape: bf16[2,4,196,25], index: 0, kind: input, shape index: {}]   ;;  %s1912_s1 = inlined_call_operand.vmem [shape: bf16[25,128], index: 1, kind: input, shape index: {}]   ;;  %s1913_s2 = inlined_call_operand.vmem [shape: f32[1,128], index: 2, kind: input, shape index: {}]   ;;  %s1914_s3 = inlined_call_operand.vmem [shape: bf16[2,196,128], index: 3, kind: output, shape index: {}]  }
   0x1 LB: > { %s1232_s13 = sadd.s32 4294967295, %s1707_s12   ;;  %p1236_p0 = scmp.ge.s32.totalorder %s1707_s12, 1  ;;  %s1707_s12 = sphi %s1730_s12, %s13_s12  }
   0x2   : > { %p137_p1 = scmp.lt.s32.totalorder %s1707_s12, 3 }
   0x4   : > { %p138_p2 = pnand %p1236_p0, %p137_p1 }
   0x5   : > { %p161_p3 = scmp.lt.s32.totalorder (!%p138_p2), %s1232_s13, 1 }
   0x6   : > { %141 = sbr.rel (%p138_p2) target bundleno = 360 (0x168), region = 32 }
   0xb   : > { %v1293_v0 = vld [vmem:[%s1912_s1 + $0x8] sm:$0xf]  ;;  %v1569_v1 = vld [vmem:[%s1912_s1 + $0x8] sm:$0x10]  ;;  %vm315_vm0 = vcmask 1043456   ;;  %vm316_vm1 = vcmask 1044480  }
   0xc   : > { %v1294_v2 = vor.u32 %v1569_v1, %v1293_v0  ;;  %v1709_v3 = vmov 65535   ;;  %s1916_s13 = smov (!%p161_p3, %s1232_s13), 1  ;;  %v1568_v7 = vld [vmem:[%s1912_s1] sm:$0xff]  ;;  %vm275_vm2 = vcmask 203776  }
   0xd   : > { %v317_v4 = vsel %vm315_vm0, 4294967295, %v1709_v3  ;;  %s1689_s18 = smul.u32 400, %s1916_s13  ;;  %v1830_v53 = vld [vmem:[%s1913_s2] ss:$0 sm:$0xff] }
   0xe   : > { %v318_v5 = vsel %vm316_vm1, %v317_v4, 0  ;;  %s1690_s26 = smul.u32 100, %s1916_s13 }
   0xf   : > { %v320_v6 = vand.u32 %v1294_v2, %v318_v5  ;;  %s1753_s23 = scalar_lea.vmem %s1911_s0, %s1689_s18 }
  0x10   : > { %v1570_v8 = vld [vmem:[%s1753_s23] sm:$0xff]  ;;  %v1594_v10 = vld [vmem:[%s1753_s23 + $0xc8] sm:$0xff]  ;;  %v1595_v14 = vld [vmem:[%s1753_s23 + $0xd0] sm:$0xff]  ;;  %s1846_s29 = scalar_lea.vmem %s1914_s3, %s1690_s26 }
  0x11   : > { %328 = vmatpush.bf16.msra.mxu0 %v320_v6  ;;  %529 = vmatpush.bf16.msra.mxu1 %v320_v6  ;;  %v1582_v9 = vld [vmem:[%s1753_s23 + $0x64] sm:$0xff]  ;;  %v1606_v11 = vld [vmem:[%s1753_s23 + $0x12c] sm:$0xff]  ;;  %v1607_v15 = vld [vmem:[%s1753_s23 + $0x134] sm:$0xff] }
  0x12   : > { %755 = vmatpush.bf16.msra.mxu2 %v320_v6  ;;  %981 = vmatpush.bf16.msra.mxu3 %v320_v6  ;;  %v1571_v12 = vld [vmem:[%s1753_s23 + $0x8] sm:$0xff]  ;;  %v1572_v16 = vld [vmem:[%s1753_s23 + $0x10] sm:$0xff]  ;;  %v1596_v18 = vld [vmem:[%s1753_s23 + $0xd8] sm:$0xff] }
  0x13   : > { %v1583_v13 = vld [vmem:[%s1753_s23 + $0x6c] sm:$0xff]  ;;  %v1584_v17 = vld [vmem:[%s1753_s23 + $0x74] sm:$0xff]  ;;  %v1608_v19 = vld [vmem:[%s1753_s23 + $0x13c] sm:$0xff] }
  0x14   : > { %v1573_v20 = vld [vmem:[%s1753_s23 + $0x18] sm:$0xff]  ;;  %v1597_v22 = vld [vmem:[%s1753_s23 + $0xe0] sm:$0xff]  ;;  %v1598_v26 = vld [vmem:[%s1753_s23 + $0xe8] sm:$0xff] }
  0x15   : > { %329 = vmatpush.bf16.msra.mxu0 %v1568_v7  ;;  %530 = vmatpush.bf16.msra.mxu1 %v1568_v7  ;;  %v1585_v21 = vld [vmem:[%s1753_s23 + $0x7c] sm:$0xff]  ;;  %v1609_v23 = vld [vmem:[%s1753_s23 + $0x144] sm:$0xff]  ;;  %v1610_v27 = vld [vmem:[%s1753_s23 + $0x14c] sm:$0xff] }
  0x16   : > { %756 = vmatpush.bf16.msra.mxu2 %v1568_v7  ;;  %982 = vmatpush.bf16.msra.mxu3 %v1568_v7  ;;  %v1574_v24 = vld [vmem:[%s1753_s23 + $0x20] sm:$0xff]  ;;  %v1575_v28 = vld [vmem:[%s1753_s23 + $0x28] sm:$0xff]  ;;  %v1599_v30 = vld [vmem:[%s1753_s23 + $0xf0] sm:$0xff] }
  0x17   : > { %v1586_v25 = vld [vmem:[%s1753_s23 + $0x84] sm:$0xff]  ;;  %v1587_v29 = vld [vmem:[%s1753_s23 + $0x8c] sm:$0xff]  ;;  %v1611_v31 = vld [vmem:[%s1753_s23 + $0x154] sm:$0xff] }
  0x18   : > { %1295 = vmatmul.msk.bf16.vlgmr.msra.gmra.mxu0 %vm275_vm2, %v1570_v8  ;;  %1381 = vmatmul.msk.bf16.vlgmr.msra.gmra.mxu1 %vm275_vm2, %v1582_v9  ;;  %v1576_v32 = vld [vmem:[%s1753_s23 + $0x30] sm:$0xff]  ;;  %v1600_v34 = vld [vmem:[%s1753_s23 + $0xf8] sm:$0xff]  ;;  %v1601_v38 = vld [vmem:[%s1753_s23 + $0x100] sm:$0xff] }
  0x19   : > { %1467 = vmatmul.msk.bf16.vlgmr.msra.gmra.mxu2 %vm275_vm2, %v1594_v10  ;;  %1553 = vmatmul.msk.bf16.vlgmr.msra.gmra.mxu3 %vm275_vm2, %v1606_v11  ;;  %v1588_v33 = vld [vmem:[%s1753_s23 + $0x94] sm:$0xff]  ;;  %v1612_v35 = vld [vmem:[%s1753_s23 + $0x15c] sm:$0xff]  ;;  %v1613_v39 = vld [vmem:[%s1753_s23 + $0x164] sm:$0xff] }
  0x1a   : > { %v1577_v36 = vld [vmem:[%s1753_s23 + $0x38] sm:$0xff]  ;;  %v1578_v40 = vld [vmem:[%s1753_s23 + $0x40] sm:$0xff]  ;;  %v1602_v44 = vld [vmem:[%s1753_s23 + $0x108] sm:$0xff] }
  0x1b   : > { %v1589_v37 = vld [vmem:[%s1753_s23 + $0x9c] sm:$0xff]  ;;  %v1590_v41 = vld [vmem:[%s1753_s23 + $0xa4] sm:$0xff]  ;;  %v1614_v45 = vld [vmem:[%s1753_s23 + $0x16c] sm:$0xff] }
  0x1c   : > { %v1579_v57 = vld [vmem:[%s1753_s23 + $0x48] sm:$0xff]  ;;  %v1603_v62 = vld [vmem:[%s1753_s23 + $0x110] sm:$0xff] }
  0x1d   : > { %v1591_v58 = vld [vmem:[%s1753_s23 + $0xac] sm:$0xff]  ;;  %v1615_v63 = vld [vmem:[%s1753_s23 + $0x174] sm:$0xff] }
  0x28   : > { %1296 = vmatmul.msk.bf16.gmra.mxu0 %vm275_vm2, %v1571_v12  ;;  %1382 = vmatmul.msk.bf16.gmra.mxu1 %vm275_vm2, %v1583_v13 }
  0x29   : > { %1468 = vmatmul.msk.bf16.gmra.mxu2 %vm275_vm2, %v1595_v14  ;;  %1554 = vmatmul.msk.bf16.gmra.mxu3 %vm275_vm2, %v1607_v15 }
  0x38   : > { %1297 = vmatmul.msk.bf16.gmra.mxu0 %vm275_vm2, %v1572_v16  ;;  %1383 = vmatmul.msk.bf16.gmra.mxu1 %vm275_vm2, %v1584_v17  ;;  %v1580_v16 = vld [vmem:[%s1753_s23 + $0x50] sm:$0xff] }
  0x39   : > { %1469 = vmatmul.msk.bf16.gmra.mxu2 %vm275_vm2, %v1596_v18  ;;  %1555 = vmatmul.msk.bf16.gmra.mxu3 %vm275_vm2, %v1608_v19  ;;  %v1592_v17 = vld [vmem:[%s1753_s23 + $0xb4] sm:$0xff] }
  0x48   : > { %1298 = vmatmul.msk.bf16.gmra.mxu0 %vm275_vm2, %v1573_v20  ;;  %1384 = vmatmul.msk.bf16.gmra.mxu1 %vm275_vm2, %v1585_v21  ;;  %v1604_v21 = vld [vmem:[%s1753_s23 + $0x118] sm:$0xff] }
  0x49   : > { %1470 = vmatmul.msk.bf16.gmra.mxu2 %vm275_vm2, %v1597_v22  ;;  %1556 = vmatmul.msk.bf16.gmra.mxu3 %vm275_vm2, %v1609_v23  ;;  %v1616_v22 = vld [vmem:[%s1753_s23 + $0x17c] sm:$0xff] }
  0x58   : > { %1299 = vmatmul.msk.bf16.gmra.mxu0 %vm275_vm2, %v1574_v24  ;;  %1385 = vmatmul.msk.bf16.gmra.mxu1 %vm275_vm2, %v1586_v25 }
  0x59   : > { %1471 = vmatmul.msk.bf16.gmra.mxu2 %vm275_vm2, %v1598_v26  ;;  %1557 = vmatmul.msk.bf16.gmra.mxu3 %vm275_vm2, %v1610_v27 }
  0x68   : > { %1300 = vmatmul.msk.bf16.gmra.mxu0 %vm275_vm2, %v1575_v28  ;;  %1386 = vmatmul.msk.bf16.gmra.mxu1 %vm275_vm2, %v1587_v29 }
  0x69   : > { %1472 = vmatmul.msk.bf16.gmra.mxu2 %vm275_vm2, %v1599_v30  ;;  %1558 = vmatmul.msk.bf16.gmra.mxu3 %vm275_vm2, %v1611_v31 }
  0x78   : > { %1301 = vmatmul.msk.bf16.gmra.mxu0 %vm275_vm2, %v1576_v32  ;;  %1387 = vmatmul.msk.bf16.gmra.mxu1 %vm275_vm2, %v1588_v33 }
  0x79   : > { %1473 = vmatmul.msk.bf16.gmra.mxu2 %vm275_vm2, %v1600_v34  ;;  %1559 = vmatmul.msk.bf16.gmra.mxu3 %vm275_vm2, %v1612_v35 }
  0x88   : > { %1302 = vmatmul.msk.bf16.gmra.mxu0 %vm275_vm2, %v1577_v36  ;;  %1388 = vmatmul.msk.bf16.gmra.mxu1 %vm275_vm2, %v1589_v37 }
  0x89   : > { %1474 = vmatmul.msk.bf16.gmra.mxu2 %vm275_vm2, %v1601_v38  ;;  %1560 = vmatmul.msk.bf16.gmra.mxu3 %vm275_vm2, %v1613_v39  ;;  %v1581_v39 = vld [vmem:[%s1753_s23 + $0x58] sm:$0xff] }
  0x95   : > { %v331_v42 = vpop.f32.mrf.mxu0  ;;  %v532_v43 = vpop.f32.mrf.mxu1 }
  0x96   : > { %v596_v46 = vmax.f32 %v331_v42, %v532_v43 }
  0x98   : > { %1303 = vmatmul.msk.bf16.gmra.mxu0 %vm275_vm2, %v1578_v40  ;;  %1389 = vmatmul.msk.bf16.gmra.mxu1 %vm275_vm2, %v1590_v41  ;;  %v1593_v40 = vld [vmem:[%s1753_s23 + $0xbc] sm:$0xff] }
  0x99   : > { %1475 = vmatmul.msk.bf16.gmra.mxu2 %vm275_vm2, %v1602_v44  ;;  %1561 = vmatmul.msk.bf16.gmra.mxu3 %vm275_vm2, %v1614_v45  ;;  %v1605_v44 = vld [vmem:[%s1753_s23 + $0x120] sm:$0xff] }
  0x9a   : > { %v1617_v45 = vld [vmem:[%s1753_s23 + $0x184] sm:$0xff] }
  0x9c   : > { %v758_v47 = vpop.f32.mrf.mxu2  ;;  %v984_v48 = vpop.f32.mrf.mxu3 }
  0x9d   : > { %v333_v49 = vpop.f32.mrf.mxu0  ;;  %v534_v50 = vpop.f32.mrf.mxu1  ;;  %v822_v51 = vmax.f32 %v596_v46, %v758_v47 }
  0x9e   : > { %v597_v54 = vmax.f32 %v333_v49, %v534_v50 }
  0x9f   : > { %v1048_v52 = vmax.f32 %v822_v51, %v984_v48 }
  0xa1   : > { %v1077_v0 = vadd.f32 %v1830_v53, %v1048_v52 }
  0xa3   : > { %v1102_v3 = vmax.f32 %v1077_v0, 0.0 }
  0xa4   : > { %v760_v55 = vpop.f32.mrf.mxu2  ;;  %v986_v56 = vpop.f32.mrf.mxu3 }
  0xa5   : > { %v823_v59 = vmax.f32 %v597_v54, %v760_v55  ;;  %v336_v60 = vpop.f32.mrf.mxu0  ;;  %v537_v61 = vpop.f32.mrf.mxu1 }
  0xa6   : > { %v598_v5 = vmax.f32 %v336_v60, %v537_v61  ;;  %v1418_v60 = vld [vmem:[%s1753_s23 + $0x128] sm:$0x3]  ;;  %v1504_v61 = vld [vmem:[%s1753_s23 + $0x18c] sm:$0x3] }
  0xa7   : > { %v1049_v1 = vmax.f32 %v823_v59, %v986_v56  ;;  %v1332_v59 = vld [vmem:[%s1753_s23 + $0xc4] sm:$0x3] }
  0xa8   : > { %1304 = vmatmul.msk.bf16.gmra.mxu0 %vm275_vm2, %v1579_v57  ;;  %1390 = vmatmul.msk.bf16.gmra.mxu1 %vm275_vm2, %v1591_v58  ;;  %v200_v58 = vld [vmem:[%s1753_s23 + $0x60] sm:$0x3]  ;;  %v470_v0 = vunpack.c.l.b16 %v1332_v59 }
  0xa9   : > { %v1078_v2 = vadd.f32 %v1830_v53, %v1049_v1  ;;  %1476 = vmatmul.msk.bf16.gmra.mxu2 %vm275_vm2, %v1603_v62  ;;  %1562 = vmatmul.msk.bf16.gmra.mxu3 %vm275_vm2, %v1615_v63  ;;  %v250_v63 = vunpack.c.l.b16 %v200_v58  ;;  %v696_v1 = vunpack.c.l.b16 %v1418_v60 }
  0xab   : > { %v1103_v4 = vmax.f32 %v1078_v2, 0.0  ;;  %v922_v2 = vunpack.c.l.b16 %v1504_v61 }
  0xac   : > { %v763_v6 = vpop.f32.mrf.mxu2  ;;  %v989_v7 = vpop.f32.mrf.mxu3 }
  0xad   : > { %v1621_v8 = vpack.c.bf16 %v1103_v4, %v1102_v3  ;;  %v338_v9 = vpop.f32.mrf.mxu0  ;;  %v539_v10 = vpop.f32.mrf.mxu1  ;;  %v824_v11 = vmax.f32 %v598_v5, %v763_v6 }
  0xae   : > { %v599_v13 = vmax.f32 %v338_v9, %v539_v10 }
  0xaf   : > { %1622 = vst [vmem:[%s1846_s29] sm:$0xff] %v1621_v8   ;;  %v1050_v12 = vmax.f32 %v824_v11, %v989_v7  ;;  %v263_v7 = vpack.c.b16 %v250_v63, %v250_v63  ;;  %v483_v8 = vpack.c.b16 %v470_v0, %v470_v0 }
  0xb1   : > { %v1079_v23 = vadd.f32 %v1830_v53, %v1050_v12  ;;  %v709_v12 = vpack.c.b16 %v696_v1, %v696_v1 }
  0xb3   : > { %v1104_v26 = vmax.f32 %v1079_v23, 0.0 }
  0xb4   : > { %v765_v14 = vpop.f32.mrf.mxu2  ;;  %v991_v15 = vpop.f32.mrf.mxu3 }
  0xb5   : > { %v825_v18 = vmax.f32 %v599_v13, %v765_v14  ;;  %v341_v19 = vpop.f32.mrf.mxu0  ;;  %v542_v20 = vpop.f32.mrf.mxu1  ;;  %v935_v13 = vpack.c.b16 %v922_v2, %v922_v2 }
  0xb6   : > { %v600_v28 = vmax.f32 %v341_v19, %v542_v20 }
  0xb7   : > { %v1051_v24 = vmax.f32 %v825_v18, %v991_v15 }
  0xb8   : > { %1305 = vmatmul.msk.bf16.gmra.mxu0 %vm275_vm2, %v1580_v16  ;;  %1391 = vmatmul.msk.bf16.gmra.mxu1 %vm275_vm2, %v1592_v17 }
  0xb9   : > { %v1080_v25 = vadd.f32 %v1830_v53, %v1051_v24  ;;  %1477 = vmatmul.msk.bf16.gmra.mxu2 %vm275_vm2, %v1604_v21  ;;  %1563 = vmatmul.msk.bf16.gmra.mxu3 %vm275_vm2, %v1616_v22 }
  0xbb   : > { %v1105_v27 = vmax.f32 %v1080_v25, 0.0 }
  0xbc   : > { %v768_v29 = vpop.f32.mrf.mxu2  ;;  %v994_v30 = vpop.f32.mrf.mxu3 }
  0xbd   : > { %v1626_v31 = vpack.c.bf16 %v1105_v27, %v1104_v26  ;;  %v343_v32 = vpop.f32.mrf.mxu0  ;;  %v544_v33 = vpop.f32.mrf.mxu1  ;;  %v826_v34 = vmax.f32 %v600_v28, %v768_v29 }
  0xbe   : > { %v601_v36 = vmax.f32 %v343_v32, %v544_v33 }
  0xbf   : > { %1678 = vst [vmem:[%s1846_s29 + $0x8] sm:$0xff] %v1626_v31   ;;  %v1052_v35 = vmax.f32 %v826_v34, %v994_v30 }
  0xc1   : > { %v1081_v46 = vadd.f32 %v1830_v53, %v1052_v35 }
  0xc3   : > { %v1106_v49 = vmax.f32 %v1081_v46, 0.0 }
  0xc4   : > { %v770_v37 = vpop.f32.mrf.mxu2  ;;  %v996_v38 = vpop.f32.mrf.mxu3 }
  0xc5   : > { %v827_v41 = vmax.f32 %v601_v36, %v770_v37  ;;  %v346_v42 = vpop.f32.mrf.mxu0  ;;  %v547_v43 = vpop.f32.mrf.mxu1 }
  0xc6   : > { %v602_v51 = vmax.f32 %v346_v42, %v547_v43 }
  0xc7   : > { %v1053_v47 = vmax.f32 %v827_v41, %v996_v38 }
  0xc8   : > { %1306 = vmatmul.msk.bf16.gmra.mxu0 %vm275_vm2, %v1581_v39  ;;  %1392 = vmatmul.msk.bf16.gmra.mxu1 %vm275_vm2, %v1593_v40 }
  0xc9   : > { %v1082_v48 = vadd.f32 %v1830_v53, %v1053_v47  ;;  %1478 = vmatmul.msk.bf16.gmra.mxu2 %vm275_vm2, %v1605_v44  ;;  %1564 = vmatmul.msk.bf16.gmra.mxu3 %vm275_vm2, %v1617_v45 }
  0xcb   : > { %v1107_v50 = vmax.f32 %v1082_v48, 0.0 }
  0xcc   : > { %v773_v52 = vpop.f32.mrf.mxu2  ;;  %v999_v54 = vpop.f32.mrf.mxu3 }
  0xcd   : > { %v1631_v55 = vpack.c.bf16 %v1107_v50, %v1106_v49  ;;  %v348_v56 = vpop.f32.mrf.mxu0  ;;  %v549_v57 = vpop.f32.mrf.mxu1  ;;  %v828_v62 = vmax.f32 %v602_v51, %v773_v52 }
  0xce   : > { %v603_v4 = vmax.f32 %v348_v56, %v549_v57 }
  0xcf   : > { %1679 = vst [vmem:[%s1846_s29 + $0x10] sm:$0xff] %v1631_v55   ;;  %v1054_v3 = vmax.f32 %v828_v62, %v999_v54 }
  0xd1   : > { %v1083_v14 = vadd.f32 %v1830_v53, %v1054_v3 }
  0xd3   : > { %v1108_v17 = vmax.f32 %v1083_v14, 0.0 }
  0xd4   : > { %v775_v5 = vpop.f32.mrf.mxu2  ;;  %v1001_v6 = vpop.f32.mrf.mxu3 }
  0xd5   : > { %v829_v9 = vmax.f32 %v603_v4, %v775_v5  ;;  %v351_v10 = vpop.f32.mrf.mxu0  ;;  %v552_v11 = vpop.f32.mrf.mxu1 }
  0xd6   : > { %v604_v19 = vmax.f32 %v351_v10, %v552_v11 }
  0xd7   : > { %v1055_v15 = vmax.f32 %v829_v9, %v1001_v6 }
  0xd8   : > { %1307 = vmatmul.msk.bf16.gmra.mxu0 %vm275_vm2, %v263_v7  ;;  %1393 = vmatmul.msk.bf16.gmra.mxu1 %vm275_vm2, %v483_v8 }
  0xd9   : > { %v1084_v16 = vadd.f32 %v1830_v53, %v1055_v15  ;;  %1479 = vmatmul.msk.bf16.gmra.mxu2 %vm275_vm2, %v709_v12  ;;  %1565 = vmatmul.msk.bf16.gmra.mxu3 %vm275_vm2, %v935_v13 }
  0xdb   : > { %v1109_v18 = vmax.f32 %v1084_v16, 0.0 }
  0xdc   : > { %v778_v20 = vpop.f32.mrf.mxu2  ;;  %v1004_v21 = vpop.f32.mrf.mxu3 }
  0xdd   : > { %v1636_v22 = vpack.c.bf16 %v1109_v18, %v1108_v17  ;;  %v353_v23 = vpop.f32.mrf.mxu0  ;;  %v554_v24 = vpop.f32.mrf.mxu1  ;;  %v830_v25 = vmax.f32 %v604_v19, %v778_v20 }
  0xde   : > { %v605_v27 = vmax.f32 %v353_v23, %v554_v24 }
  0xdf   : > { %1680 = vst [vmem:[%s1846_s29 + $0x18] sm:$0xff] %v1636_v22   ;;  %v1056_v26 = vmax.f32 %v830_v25, %v1004_v21 }
  0xe1   : > { %v1085_v33 = vadd.f32 %v1830_v53, %v1056_v26 }
  0xe3   : > { %v1110_v36 = vmax.f32 %v1085_v33, 0.0 }
  0xe4   : > { %v780_v28 = vpop.f32.mrf.mxu2  ;;  %v1006_v29 = vpop.f32.mrf.mxu3 }
  0xe5   : > { %v831_v30 = vmax.f32 %v605_v27, %v780_v28  ;;  %v356_v31 = vpop.f32.mrf.mxu0  ;;  %v557_v32 = vpop.f32.mrf.mxu1 }
  0xe6   : > { %v606_v38 = vmax.f32 %v356_v31, %v557_v32 }
  0xe7   : > { %v1057_v34 = vmax.f32 %v831_v30, %v1006_v29 }
  0xe9   : > { %v1086_v35 = vadd.f32 %v1830_v53, %v1057_v34 }
  0xeb   : > { %v1111_v37 = vmax.f32 %v1086_v35, 0.0 }
  0xec   : > { %v783_v39 = vpop.f32.mrf.mxu2  ;;  %v1009_v40 = vpop.f32.mrf.mxu3 }
  0xed   : > { %v1641_v41 = vpack.c.bf16 %v1111_v37, %v1110_v36  ;;  %v358_v42 = vpop.f32.mrf.mxu0  ;;  %v559_v43 = vpop.f32.mrf.mxu1  ;;  %v832_v44 = vmax.f32 %v606_v38, %v783_v39 }
  0xee   : > { %v607_v46 = vmax.f32 %v358_v42, %v559_v43 }
  0xef   : > { %1681 = vst [vmem:[%s1846_s29 + $0x20] sm:$0xff] %v1641_v41   ;;  %v1058_v45 = vmax.f32 %v832_v44, %v1009_v40 }
  0xf1   : > { %v1087_v52 = vadd.f32 %v1830_v53, %v1058_v45 }
  0xf3   : > { %v1112_v56 = vmax.f32 %v1087_v52, 0.0 }
  0xf4   : > { %v785_v47 = vpop.f32.mrf.mxu2  ;;  %v1011_v48 = vpop.f32.mrf.mxu3 }
  0xf5   : > { %v833_v49 = vmax.f32 %v607_v46, %v785_v47  ;;  %v361_v50 = vpop.f32.mrf.mxu0  ;;  %v562_v51 = vpop.f32.mrf.mxu1 }
  0xf6   : > { %v608_v58 = vmax.f32 %v361_v50, %v562_v51 }
  0xf7   : > { %v1059_v54 = vmax.f32 %v833_v49, %v1011_v48 }
  0xf9   : > { %v1088_v55 = vadd.f32 %v1830_v53, %v1059_v54 }
  0xfb   : > { %v1113_v57 = vmax.f32 %v1088_v55, 0.0 }
  0xfc   : > { %v788_v59 = vpop.f32.mrf.mxu2  ;;  %v1014_v60 = vpop.f32.mrf.mxu3 }
  0xfd   : > { %v1646_v61 = vpack.c.bf16 %v1113_v57, %v1112_v56  ;;  %v363_v62 = vpop.f32.mrf.mxu0  ;;  %v564_v63 = vpop.f32.mrf.mxu1  ;;  %v834_v0 = vmax.f32 %v608_v58, %v788_v59 }
  0xfe   : > { %v609_v2 = vmax.f32 %v363_v62, %v564_v63 }
  0xff   : > { %1682 = vst [vmem:[%s1846_s29 + $0x28] sm:$0xff] %v1646_v61   ;;  %v1060_v1 = vmax.f32 %v834_v0, %v1014_v60 }
 0x101   : > { %v1089_v8 = vadd.f32 %v1830_v53, %v1060_v1 }
 0x103   : > { %v1114_v11 = vmax.f32 %v1089_v8, 0.0 }
 0x104   : > { %v790_v3 = vpop.f32.mrf.mxu2  ;;  %v1016_v4 = vpop.f32.mrf.mxu3 }
 0x105   : > { %v835_v5 = vmax.f32 %v609_v2, %v790_v3  ;;  %v366_v6 = vpop.f32.mrf.mxu0  ;;  %v567_v7 = vpop.f32.mrf.mxu1 }
 0x106   : > { %v610_v13 = vmax.f32 %v366_v6, %v567_v7 }
 0x107   : > { %v1061_v9 = vmax.f32 %v835_v5, %v1016_v4 }
 0x109   : > { %v1090_v10 = vadd.f32 %v1830_v53, %v1061_v9 }
 0x10b   : > { %v1115_v12 = vmax.f32 %v1090_v10, 0.0 }
 0x10c   : > { %v793_v14 = vpop.f32.mrf.mxu2  ;;  %v1019_v15 = vpop.f32.mrf.mxu3 }
 0x10d   : > { %v1651_v16 = vpack.c.bf16 %v1115_v12, %v1114_v11  ;;  %v368_v17 = vpop.f32.mrf.mxu0  ;;  %v569_v18 = vpop.f32.mrf.mxu1  ;;  %v836_v19 = vmax.f32 %v610_v13, %v793_v14 }
 0x10e   : > { %v611_v21 = vmax.f32 %v368_v17, %v569_v18 }
 0x10f   : > { %1683 = vst [vmem:[%s1846_s29 + $0x30] sm:$0xff] %v1651_v16   ;;  %v1062_v20 = vmax.f32 %v836_v19, %v1019_v15 }
 0x111   : > { %v1091_v27 = vadd.f32 %v1830_v53, %v1062_v20 }
 0x113   : > { %v1116_v30 = vmax.f32 %v1091_v27, 0.0 }
 0x114   : > { %v795_v22 = vpop.f32.mrf.mxu2  ;;  %v1021_v23 = vpop.f32.mrf.mxu3 }
 0x115   : > { %v837_v24 = vmax.f32 %v611_v21, %v795_v22  ;;  %v371_v25 = vpop.f32.mrf.mxu0  ;;  %v572_v26 = vpop.f32.mrf.mxu1 }
 0x116   : > { %v612_v32 = vmax.f32 %v371_v25, %v572_v26 }
 0x117   : > { %v1063_v28 = vmax.f32 %v837_v24, %v1021_v23 }
 0x119   : > { %v1092_v29 = vadd.f32 %v1830_v53, %v1063_v28 }
 0x11b   : > { %v1117_v31 = vmax.f32 %v1092_v29, 0.0 }
 0x11c   : > { %v798_v33 = vpop.f32.mrf.mxu2  ;;  %v1024_v34 = vpop.f32.mrf.mxu3 }
 0x11d   : > { %v1656_v35 = vpack.c.bf16 %v1117_v31, %v1116_v30  ;;  %v373_v36 = vpop.f32.mrf.mxu0  ;;  %v574_v37 = vpop.f32.mrf.mxu1  ;;  %v838_v38 = vmax.f32 %v612_v32, %v798_v33 }
 0x11e   : > { %v613_v40 = vmax.f32 %v373_v36, %v574_v37 }
 0x11f   : > { %1684 = vst [vmem:[%s1846_s29 + $0x38] sm:$0xff] %v1656_v35   ;;  %v1064_v39 = vmax.f32 %v838_v38, %v1024_v34 }
 0x121   : > { %v1093_v46 = vadd.f32 %v1830_v53, %v1064_v39 }
 0x123   : > { %v1118_v49 = vmax.f32 %v1093_v46, 0.0 }
 0x124   : > { %v800_v41 = vpop.f32.mrf.mxu2  ;;  %v1026_v42 = vpop.f32.mrf.mxu3 }
 0x125   : > { %v839_v43 = vmax.f32 %v613_v40, %v800_v41  ;;  %v376_v44 = vpop.f32.mrf.mxu0  ;;  %v577_v45 = vpop.f32.mrf.mxu1 }
 0x126   : > { %v614_v51 = vmax.f32 %v376_v44, %v577_v45 }
 0x127   : > { %v1065_v47 = vmax.f32 %v839_v43, %v1026_v42 }
 0x129   : > { %v1094_v48 = vadd.f32 %v1830_v53, %v1065_v47 }
 0x12b   : > { %v1119_v50 = vmax.f32 %v1094_v48, 0.0 }
 0x12c   : > { %v803_v52 = vpop.f32.mrf.mxu2  ;;  %v1029_v54 = vpop.f32.mrf.mxu3 }
 0x12d   : > { %v1661_v55 = vpack.c.bf16 %v1119_v50, %v1118_v49  ;;  %v378_v56 = vpop.f32.mrf.mxu0  ;;  %v579_v57 = vpop.f32.mrf.mxu1  ;;  %v840_v58 = vmax.f32 %v614_v51, %v803_v52 }
 0x12e   : > { %v615_v60 = vmax.f32 %v378_v56, %v579_v57 }
 0x12f   : > { %1685 = vst [vmem:[%s1846_s29 + $0x40] sm:$0xff] %v1661_v55   ;;  %v1066_v59 = vmax.f32 %v840_v58, %v1029_v54 }
 0x131   : > { %v1095_v2 = vadd.f32 %v1830_v53, %v1066_v59 }
 0x133   : > { %v1120_v5 = vmax.f32 %v1095_v2, 0.0 }
 0x134   : > { %v805_v61 = vpop.f32.mrf.mxu2  ;;  %v1031_v62 = vpop.f32.mrf.mxu3 }
 0x135   : > { %v841_v63 = vmax.f32 %v615_v60, %v805_v61  ;;  %v381_v0 = vpop.f32.mrf.mxu0  ;;  %v582_v1 = vpop.f32.mrf.mxu1 }
 0x136   : > { %v616_v7 = vmax.f32 %v381_v0, %v582_v1 }
 0x137   : > { %v1067_v3 = vmax.f32 %v841_v63, %v1031_v62 }
 0x139   : > { %v1096_v4 = vadd.f32 %v1830_v53, %v1067_v3 }
 0x13b   : > { %v1121_v6 = vmax.f32 %v1096_v4, 0.0 }
 0x13c   : > { %v808_v8 = vpop.f32.mrf.mxu2  ;;  %v1034_v9 = vpop.f32.mrf.mxu3 }
 0x13d   : > { %v1666_v10 = vpack.c.bf16 %v1121_v6, %v1120_v5  ;;  %v383_v11 = vpop.f32.mrf.mxu0  ;;  %v584_v12 = vpop.f32.mrf.mxu1  ;;  %v842_v13 = vmax.f32 %v616_v7, %v808_v8 }
 0x13e   : > { %v617_v15 = vmax.f32 %v383_v11, %v584_v12 }
 0x13f   : > { %1686 = vst [vmem:[%s1846_s29 + $0x48] sm:$0xff] %v1666_v10   ;;  %v1068_v14 = vmax.f32 %v842_v13, %v1034_v9 }
 0x141   : > { %v1097_v21 = vadd.f32 %v1830_v53, %v1068_v14 }
 0x143   : > { %v1122_v24 = vmax.f32 %v1097_v21, 0.0 }
 0x144   : > { %v810_v16 = vpop.f32.mrf.mxu2  ;;  %v1036_v17 = vpop.f32.mrf.mxu3 }
 0x145   : > { %v843_v18 = vmax.f32 %v617_v15, %v810_v16  ;;  %v386_v19 = vpop.f32.mrf.mxu0  ;;  %v587_v20 = vpop.f32.mrf.mxu1 }
 0x146   : > { %v618_v26 = vmax.f32 %v386_v19, %v587_v20 }
 0x147   : > { %v1069_v22 = vmax.f32 %v843_v18, %v1036_v17 }
 0x149   : > { %v1098_v23 = vadd.f32 %v1830_v53, %v1069_v22 }
 0x14b   : > { %v1123_v25 = vmax.f32 %v1098_v23, 0.0 }
 0x14c   : > { %v813_v27 = vpop.f32.mrf.mxu2  ;;  %v1039_v28 = vpop.f32.mrf.mxu3 }
 0x14d   : > { %v1671_v29 = vpack.c.bf16 %v1123_v25, %v1122_v24  ;;  %v388_v30 = vpop.f32.mrf.mxu0  ;;  %v589_v31 = vpop.f32.mrf.mxu1  ;;  %v844_v32 = vmax.f32 %v618_v26, %v813_v27 }
 0x14e   : > { %v619_v34 = vmax.f32 %v388_v30, %v589_v31 }
 0x14f   : > { %1687 = vst [vmem:[%s1846_s29 + $0x50] sm:$0xff] %v1671_v29   ;;  %v1070_v33 = vmax.f32 %v844_v32, %v1039_v28 }
 0x151   : > { %v1099_v40 = vadd.f32 %v1830_v53, %v1070_v33 }
 0x153   : > { %v1124_v44 = vmax.f32 %v1099_v40, 0.0 }
 0x154   : > { %v815_v35 = vpop.f32.mrf.mxu2  ;;  %v1041_v36 = vpop.f32.mrf.mxu3 }
 0x155   : > { %v845_v37 = vmax.f32 %v619_v34, %v815_v35  ;;  %v391_v38 = vpop.f32.mrf.mxu0  ;;  %v592_v39 = vpop.f32.mrf.mxu1 }
 0x156   : > { %v620_v43 = vmax.f32 %v391_v38, %v592_v39 }
 0x157   : > { %v1071_v41 = vmax.f32 %v845_v37, %v1041_v36 }
 0x159   : > { %v1100_v42 = vadd.f32 %v1830_v53, %v1071_v41 }
 0x15b   : > { %v1125_v45 = vmax.f32 %v1100_v42, 0.0 }
 0x15c   : > { %v818_v46 = vpop.f32.mrf.mxu2  ;;  %v1044_v47 = vpop.f32.mrf.mxu3 }
 0x15d   : > { %v1676_v48 = vpack.c.bf16 %v1125_v45, %v1124_v44  ;;  %v846_v49 = vmax.f32 %v620_v43, %v818_v46  ;;  %v393_v50 = vpop.f32.mrf.mxu0  ;;  %v594_v51 = vpop.f32.mrf.mxu1 }
 0x15f   : > { %1688 = vst [vmem:[%s1846_s29 + $0x58] sm:$0xff] %v1676_v48   ;;  %v1072_v52 = vmax.f32 %v846_v49, %v1044_v47 }
 0x161   : > { %v1101_v54 = vadd.f32 %v1830_v53, %v1072_v52 }
 0x163   : > { %v1126_v55 = vmax.f32 %v1101_v54, 0.0 }
 0x164   : > { %v820_v56 = vpop.f32.mrf.mxu2  ;;  %v1046_v57 = vpop.f32.mrf.mxu3 }
 0x165   : > { %v1151_v58 = vpack.c.bf16 %v1126_v55, %v1126_v55 }
 0x167   : > { %1176 = vst [vmem:[%s1846_s29 + $0x60] sm:$0x3] %v1151_v58 }
 0x168 PF: > { %s13_s12 = sadd.s32 1, %s1707_s12  }
 0x169   : > { %p10_p4 = scmp.ge.s32.totalorder %s13_s12, 4  }
 0x16b   :  { %12 = sbr.rel (!%p10_p4) target bundleno = 1 (0x1), region = 65 }

// kernel: net_forward.4
= control target key start
LH: loop header
LB: loop body
LE: loop exit
PB: predicated region body
PF: predicated region fallthrough
CT: control target
= control target key end

     0   :  { %s822_s12 = smov 0   ;;  %s981_s0 = inlined_call_operand.vmem [shape: bf16[2,4,25,150], index: 0, kind: input, shape index: {}]   ;;  %s982_s1 = inlined_call_operand.vmem [shape: bf16[150,128], index: 1, kind: input, shape index: {}]   ;;  %s983_s2 = inlined_call_operand.vmem [shape: f32[1,128], index: 2, kind: input, shape index: {}]   ;;  %s984_s3 = inlined_call_operand.vmem [shape: bf16[2,25,128], index: 3, kind: output, shape index: {}]  }
   0x1 LB: > { %s612_s13 = sadd.s32 4294967295, %s800_s12   ;;  %p616_p0 = scmp.ge.s32.totalorder %s800_s12, 1  ;;  %s800_s12 = sphi %s822_s12, %s13_s12  }
   0x2   : > { %p137_p1 = scmp.lt.s32.totalorder %s800_s12, 3 }
   0x4   : > { %p138_p2 = pnand %p616_p0, %p137_p1 }
   0x5   : > { %p161_p3 = scmp.lt.s32.totalorder (!%p138_p2), %s612_s13, 1 }
   0x6   : > { %141 = sbr.rel (%p138_p2) target bundleno = 240 (0xf0), region = 32 }
   0xb   : > { %v833_v0 = vld [vmem:[%s982_s1 + $0x38] sm:$0xff]  ;;  %v190_v1 = vld [vmem:[%s982_s1 + $0x48] sm:$0x7]  ;;  %vm277_vm0 = vcmask 1042432   ;;  %s986_s13 = smov (!%p161_p3, %s612_s13), 1  ;;  %v845_v4 = vld [vmem:[%s982_s1 + $0x30] sm:$0xff] }
   0xc   : > { %v250_v2 = vunpack.c.l.b16 %v190_v1  ;;  %281 = vmatpush.bf16.msra.mxu0 %v833_v0  ;;  %348 = vmatpush.bf16.msra.mxu2 %v833_v0  ;;  %s743_s20 = sshll.u32 %s986_s13, 7  ;;  %v851_v6 = vld [vmem:[%s982_s1 + $0x40] sm:$0xff]  ;;  %v866_v10 = vld [vmem:[%s982_s1 + $0x28] sm:$0xff]  ;;  %vm270_vm1 = vcmask 179200   ;;  %v886_v15 = vld [vmem:[%s982_s1 + $0x18] sm:$0xff]  ;;  %s744_s15 = sshll.u32 %s986_s13, 4 }
   0xd   : > { %s856_s25 = scalar_lea.vmem %s981_s0, %s743_s20  ;;  %v876_v14 = vld [vmem:[%s982_s1 + $0x20] sm:$0xff]  ;;  %v895_v16 = vld [vmem:[%s982_s1 + $0x10] sm:$0xff]  ;;  %v908_v21 = vld [vmem:[%s982_s1 + $0x8] sm:$0xff]  ;;  %s170_s18 = scalar_lea.vmem %s984_s3, %s744_s15  ;;  %vm551_vm2 = vcmask 1040384   ;;  %vm552_vm3 = vsmask.f32 256 }
   0xe   : > { %v260_v3 = vpack.c.b16 %v250_v2, %v250_v2  ;;  %v754_v7 = vld [vmem:[%s856_s25 + $0x4] sm:$0xf]  ;;  %v625_v8 = vld [vmem:[%s856_s25 + $0x8] sm:$0xf0]  ;;  %v756_v17 = vld [vmem:[%s856_s25 + $0x14] sm:$0xf] }
   0xf   : > { %v758_v9 = vld [vmem:[%s856_s25 + $0x24] sm:$0xf]  ;;  %v683_v11 = vld [vmem:[%s856_s25 + $0x28] sm:$0xf0]  ;;  %v628_v12 = vor.u32 %v754_v7, %v625_v8  ;;  %v633_v18 = vld [vmem:[%s856_s25 + $0x18] sm:$0x10] }
  0x10   : > { %v279_v5 = vsel %vm277_vm0, %v260_v3, 0  ;;  %282 = vmatpush.bf16.msra.mxu0 %v845_v4  ;;  %349 = vmatpush.bf16.msra.mxu2 %v845_v4  ;;  %v686_v13 = vor.u32 %v758_v9, %v683_v11  ;;  %v760_v19 = vld [vmem:[%s856_s25 + $0x34] sm:$0xf]  ;;  %v691_v20 = vld [vmem:[%s856_s25 + $0x38] sm:$0x10]  ;;  %v636_v22 = vor.u32 %v756_v17, %v633_v18  ;;  %v914_v24 = vld [vmem:[%s982_s1] sm:$0xff] }
  0x11   : > { %306 = vmatpush.bf16.msra.mxu1 %v279_v5  ;;  %373 = vmatpush.bf16.msra.mxu3 %v279_v5  ;;  %v694_v23 = vor.u32 %v760_v19, %v691_v20  ;;  %v623_v25 = vld [vmem:[%s856_s25] sm:$0xf]  ;;  %v755_v26 = vld [vmem:[%s856_s25 + $0x4] sm:$0xf0]  ;;  %v762_v33 = vld [vmem:[%s856_s25 + $0x44] sm:$0xf] }
  0x12   : > { %v681_v27 = vld [vmem:[%s856_s25 + $0x20] sm:$0xf]  ;;  %v759_v28 = vld [vmem:[%s856_s25 + $0x24] sm:$0xf0]  ;;  %v624_v29 = vor.u32 %v755_v26, %v623_v25  ;;  %v705_v34 = vld [vmem:[%s856_s25 + $0x48] sm:$0xf0] }
  0x13   : > { %v682_v30 = vor.u32 %v759_v28, %v681_v27  ;;  %v703_v31 = vld [vmem:[%s856_s25 + $0x40] sm:$0xf]  ;;  %v763_v32 = vld [vmem:[%s856_s25 + $0x44] sm:$0xf0]  ;;  %v708_v36 = vor.u32 %v762_v33, %v705_v34  ;;  %v631_v37 = vld [vmem:[%s856_s25 + $0x10] sm:$0xf] }
  0x14   : > { %283 = vmatpush.bf16.msra.mxu0 %v866_v10  ;;  %350 = vmatpush.bf16.msra.mxu2 %v866_v10  ;;  %v704_v35 = vor.u32 %v763_v32, %v703_v31  ;;  %v757_v38 = vld [vmem:[%s856_s25 + $0x14] sm:$0x10]  ;;  %v689_v39 = vld [vmem:[%s856_s25 + $0x30] sm:$0xf]  ;;  %v764_v45 = vld [vmem:[%s856_s25 + $0x54] sm:$0xf] }
  0x15   : > { %307 = vmatpush.bf16.msra.mxu1 %v851_v6  ;;  %374 = vmatpush.bf16.msra.mxu3 %v851_v6  ;;  %v761_v40 = vld [vmem:[%s856_s25 + $0x34] sm:$0x10]  ;;  %v632_v41 = vor.u32 %v757_v38, %v631_v37  ;;  %v711_v43 = vld [vmem:[%s856_s25 + $0x50] sm:$0xf]  ;;  %v713_v46 = vld [vmem:[%s856_s25 + $0x58] sm:$0x10] }
  0x16   : > { %v690_v42 = vor.u32 %v761_v40, %v689_v39  ;;  %v765_v44 = vld [vmem:[%s856_s25 + $0x54] sm:$0x10]  ;;  %v716_v48 = vor.u32 %v764_v45, %v713_v46  ;;  %v766_v49 = vld [vmem:[%s856_s25 + $0x64] sm:$0xf]  ;;  %v727_v50 = vld [vmem:[%s856_s25 + $0x68] sm:$0xf0] }
  0x17   : > { %v712_v47 = vor.u32 %v765_v44, %v711_v43  ;;  %v725_v51 = vld [vmem:[%s856_s25 + $0x60] sm:$0xf]  ;;  %v767_v52 = vld [vmem:[%s856_s25 + $0x64] sm:$0xf0]  ;;  %v730_v53 = vor.u32 %v766_v49, %v727_v50  ;;  %v733_v55 = vld [vmem:[%s856_s25 + $0x70] sm:$0xf] }
  0x18   : > { %673 = vmatmul.msk.bf16.vlgmr.msra.gmra.mxu1 %vm270_vm1, %v628_v12  ;;  %695 = vmatmul.msk.bf16.vlgmr.msra.gmra.mxu3 %vm270_vm1, %v686_v13  ;;  %v726_v54 = vor.u32 %v767_v52, %v725_v51  ;;  %v769_v56 = vld [vmem:[%s856_s25 + $0x74] sm:$0x10]  ;;  %v768_v57 = vld [vmem:[%s856_s25 + $0x74] sm:$0xf]  ;;  %v735_v58 = vld [vmem:[%s856_s25 + $0x78] sm:$0x10] }
  0x19   : > { %444 = vmatpush.bf16.msrb.mxu3 %v279_v5  ;;  %419 = vmatpush.bf16.msrb.mxu1 %v833_v0  ;;  %v734_v59 = vor.u32 %v769_v56, %v733_v55  ;;  %v738_v60 = vor.u32 %v768_v57, %v735_v58  ;;  %vm553_vm4 = vmand %vm551_vm2, %vm552_vm3 }
  0x1a   : > { %284 = vmatpush.bf16.msra.mxu0 %v876_v14  ;;  %351 = vmatpush.bf16.msra.mxu2 %v876_v14 }
  0x1d   : > { %420 = vmatpush.bf16.msrb.mxu1 %v845_v4  ;;  %445 = vmatpush.bf16.msrb.mxu3 %v851_v6 }
  0x1e   : > { %285 = vmatpush.bf16.msra.mxu0 %v886_v15  ;;  %352 = vmatpush.bf16.msra.mxu2 %v886_v15 }
  0x21   : > { %783 = vmatpush.bf16.msra.mxu3 %v279_v5  ;;  %421 = vmatpush.bf16.msrb.mxu1 %v866_v10 }
  0x22   : > { %286 = vmatpush.bf16.msra.mxu0 %v895_v16  ;;  %353 = vmatpush.bf16.msra.mxu2 %v895_v16 }
  0x25   : > { %784 = vmatpush.bf16.msra.mxu3 %v851_v6  ;;  %422 = vmatpush.bf16.msrb.mxu1 %v876_v14 }
  0x26   : > { %287 = vmatpush.bf16.msra.mxu0 %v908_v21  ;;  %354 = vmatpush.bf16.msra.mxu2 %v908_v21 }
  0x28   : > { %674 = vmatmul.msk.bf16.gmra.mxu1 %vm270_vm1, %v636_v22  ;;  %696 = vmatmul.msk.bf16.gmra.mxu3 %vm270_vm1, %v694_v23 }
  0x29   : > { %423 = vmatpush.bf16.msrb.mxu1 %v886_v15 }
  0x2a   : > { %288 = vmatpush.bf16.msra.mxu0 %v914_v24  ;;  %355 = vmatpush.bf16.msra.mxu2 %v914_v24 }
  0x2d   : > { %424 = vmatpush.bf16.msrb.mxu1 %v895_v16  ;;  %289 = vmatmul.bf16.vlgmr.msra.gmra.mxu0 %v624_v29 }
  0x2e   : > { %490 = vmatpush.bf16.msrb.mxu0 %v833_v0  ;;  %515 = vmatpush.bf16.msrb.mxu2 %v279_v5 }
  0x2f   : > { %356 = vmatmul.bf16.vlgmr.msra.gmra.mxu2 %v682_v30 }
  0x31   : > { %425 = vmatpush.bf16.msrb.mxu1 %v908_v21 }
  0x32   : > { %491 = vmatpush.bf16.msrb.mxu0 %v845_v4  ;;  %516 = vmatpush.bf16.msrb.mxu2 %v851_v6 }
  0x35   : > { %426 = vmatpush.bf16.msrb.mxu1 %v914_v24 }
  0x36   : > { %492 = vmatpush.bf16.msrb.mxu0 %v866_v10 }
  0x38   : > { %427 = vmatmul.bf16.vlgmr.msrb.gmra.mxu1 %v704_v35  ;;  %717 = vmatmul.msk.bf16.vlgmr.msrb.gmra.mxu3 %vm270_vm1, %v708_v36  ;;  %v793_v36 = vld [vmem:[%s983_s2] ss:$0 sm:$0xff] }
  0x39   : > { %775 = vmatpush.bf16.msra.mxu1 %v833_v0 }
  0x3a   : > { %493 = vmatpush.bf16.msrb.mxu0 %v876_v14 }
  0x3d   : > { %776 = vmatpush.bf16.msra.mxu1 %v845_v4  ;;  %294 = vmatmul.bf16.gmra.mxu0 %v632_v41 }
  0x3e   : > { %494 = vmatpush.bf16.msrb.mxu0 %v886_v15 }
  0x3f   : > { %361 = vmatmul.bf16.gmra.mxu2 %v690_v42 }
  0x41   : > { %777 = vmatpush.bf16.msra.mxu1 %v866_v10 }
  0x42   : > { %495 = vmatpush.bf16.msrb.mxu0 %v895_v16 }
  0x45   : > { %778 = vmatpush.bf16.msra.mxu1 %v876_v14 }
  0x46   : > { %496 = vmatpush.bf16.msrb.mxu0 %v908_v21 }
  0x48   : > { %432 = vmatmul.bf16.gmra.mxu1 %v712_v47  ;;  %718 = vmatmul.msk.bf16.gmra.mxu3 %vm270_vm1, %v716_v48 }
  0x49   : > { %779 = vmatpush.bf16.msra.mxu1 %v886_v15 }
  0x4a   : > { %497 = vmatpush.bf16.msrb.mxu0 %v914_v24 }
  0x4d   : > { %780 = vmatpush.bf16.msra.mxu1 %v895_v16  ;;  %498 = vmatmul.bf16.vlgmr.msrb.gmra.mxu0 %v726_v54 }
  0x4f   : > { %739 = vmatmul.msk.bf16.vlgmr.msrb.gmra.mxu2 %vm270_vm1, %v730_v53 }
  0x51   : > { %781 = vmatpush.bf16.msra.mxu1 %v908_v21 }
  0x55   : > { %782 = vmatpush.bf16.msra.mxu1 %v914_v24 }
  0x58   : > { %503 = vmatmul.bf16.vlgmr.msra.gmra.mxu1 %v734_v59  ;;  %740 = vmatmul.msk.bf16.vlgmr.msra.gmra.mxu3 %vm270_vm1, %v738_v60 }
  0x95   : > { %v309_v61 = vpop.f32.mrf.mxu1 }
  0x9b   : > { %v376_v62 = vpop.f32.mrf.mxu3 }
  0x9d   : > { %v311_v63 = vpop.f32.mrf.mxu1 }
  0xa3   : > { %v378_v0 = vpop.f32.mrf.mxu3 }
  0xa5   : > { %v314_v1 = vpop.f32.mrf.mxu1 }
  0xaa   : > { %v290_v2 = vpop.f32.mrf.mxu0 }
  0xab   : > { %v381_v3 = vpop.f32.mrf.mxu3  ;;  %v310_v23 = vadd.f32 %v309_v61, %v290_v2 }
  0xad   : > { %v316_v4 = vpop.f32.mrf.mxu1 }
  0xb2   : > { %v357_v5 = vpop.f32.mrf.mxu2  ;;  %v292_v6 = vpop.f32.mrf.mxu0 }
  0xb3   : > { %v383_v7 = vpop.f32.mrf.mxu3  ;;  %v377_v20 = vadd.f32 %v376_v62, %v357_v5  ;;  %v312_v29 = vadd.f32 %v311_v63, %v292_v6 }
  0xb5   : > { %v428_v8 = vpop.f32.mrf.mxu1  ;;  %v386_v25 = vmax.f32 %v310_v23, %v377_v20 }
  0xba   : > { %v359_v9 = vpop.f32.mrf.mxu2  ;;  %v295_v10 = vpop.f32.mrf.mxu0 }
  0xbb   : > { %v447_v11 = vpop.f32.mrf.mxu3  ;;  %v379_v26 = vadd.f32 %v378_v0, %v359_v9  ;;  %v315_v37 = vadd.f32 %v314_v1, %v295_v10 }
  0xbc   : > { %v448_v24 = vadd.f32 %v447_v11, %v428_v8 }
  0xbd   : > { %v430_v12 = vpop.f32.mrf.mxu1  ;;  %v387_v34 = vmax.f32 %v312_v29, %v379_v26 }
  0xbe   : > { %v457_v30 = vmax.f32 %v386_v25, %v448_v24 }
  0xc2   : > { %v362_v13 = vpop.f32.mrf.mxu2  ;;  %v297_v15 = vpop.f32.mrf.mxu0 }
  0xc3   : > { %v449_v14 = vpop.f32.mrf.mxu3  ;;  %v382_v32 = vadd.f32 %v381_v3, %v362_v13  ;;  %v317_v54 = vadd.f32 %v316_v4, %v297_v15  ;;  %v554_v4 = vld [vmem:[%s170_s18 + $0xc] sm:$0x1] }
  0xc4   : > { %v450_v31 = vadd.f32 %v449_v14, %v430_v12 }
  0xc5   : > { %v433_v16 = vpop.f32.mrf.mxu1  ;;  %v388_v43 = vmax.f32 %v315_v37, %v382_v32 }
  0xc6   : > { %v458_v40 = vmax.f32 %v387_v34, %v450_v31 }
  0xca   : > { %v364_v17 = vpop.f32.mrf.mxu2  ;;  %v499_v19 = vpop.f32.mrf.mxu0 }
  0xcb   : > { %v452_v18 = vpop.f32.mrf.mxu3  ;;  %v384_v50 = vadd.f32 %v383_v7, %v364_v17 }
  0xcc   : > { %v453_v38 = vadd.f32 %v452_v18, %v433_v16 }
  0xcd   : > { %v435_v21 = vpop.f32.mrf.mxu1  ;;  %v389_v58 = vmax.f32 %v317_v54, %v384_v50 }
  0xce   : > { %v459_v47 = vmax.f32 %v388_v43, %v453_v38 }
  0xd2   : > { %v518_v22 = vpop.f32.mrf.mxu2  ;;  %v501_v33 = vpop.f32.mrf.mxu0 }
  0xd3   : > { %v519_v27 = vadd.f32 %v518_v22, %v499_v19  ;;  %v454_v28 = vpop.f32.mrf.mxu3 }
  0xd4   : > { %v455_v55 = vadd.f32 %v454_v28, %v435_v21 }
  0xd5   : > { %v528_v35 = vmax.f32 %v457_v30, %v519_v27  ;;  %v504_v41 = vpop.f32.mrf.mxu1 }
  0xd6   : > { %v460_v62 = vmax.f32 %v389_v58, %v455_v55 }
  0xd7   : > { %v536_v44 = vadd.f32 %v793_v36, %v528_v35 }
  0xd9   : > { %v540_v52 = vmax.f32 %v536_v44, 0.0 }
  0xda   : > { %v520_v39 = vpop.f32.mrf.mxu2 }
  0xdb   : > { %v521_v42 = vadd.f32 %v520_v39, %v501_v33  ;;  %v523_v46 = vpop.f32.mrf.mxu3 }
  0xdc   : > { %v524_v48 = vadd.f32 %v523_v46, %v504_v41 }
  0xdd   : > { %v529_v45 = vmax.f32 %v458_v40, %v521_v42  ;;  %v506_v60 = vpop.f32.mrf.mxu1 }
  0xde   : > { %v530_v51 = vmax.f32 %v459_v47, %v524_v48 }
  0xdf   : > { %v537_v49 = vadd.f32 %v793_v36, %v529_v45 }
  0xe0   : > { %v538_v56 = vadd.f32 %v793_v36, %v530_v51 }
  0xe1   : > { %v541_v53 = vmax.f32 %v537_v49, 0.0 }
  0xe2   : > { %v542_v59 = vmax.f32 %v538_v56, 0.0 }
  0xe3   : > { %v773_v57 = vpack.c.bf16 %v541_v53, %v540_v52  ;;  %v525_v61 = vpop.f32.mrf.mxu3 }
  0xe4   : > { %v546_v63 = vpack.c.bf16 %v542_v59, %v542_v59  ;;  %v526_v0 = vadd.f32 %v525_v61, %v506_v60 }
  0xe5   : > { %774 = vst [vmem:[%s170_s18] sm:$0xff] %v773_v57  }
  0xe6   : > { %550 = vst [vmem:[%s170_s18 + $0x8] sm:$0xf] %v546_v63  ;;  %v531_v1 = vmax.f32 %v460_v62, %v526_v0 }
  0xe8   : > { %v539_v2 = vadd.f32 %v793_v36, %v531_v1 }
  0xea   : > { %v543_v3 = vmax.f32 %v539_v2, 0.0 }
  0xec   : > { %v547_v5 = vpack.c.bf16 %v543_v3, %v543_v3 }
  0xee   : > { %v555_v6 = vsel %vm553_vm4, %v547_v5, %v554_v4 }
  0xef   : > { %556 = vst [vmem:[%s170_s18 + $0xc] sm:$0x1] %v555_v6 }
  0xf0 PF: > { %s13_s12 = sadd.s32 1, %s800_s12  }
  0xf1   : > { %p10_p4 = scmp.ge.s32.totalorder %s13_s12, 4  }
  0xf3   :  { %12 = sbr.rel (!%p10_p4) target bundleno = 1 (0x1), region = 65 }

// kernel: net_forward.5
= control target key start
LH: loop header
LB: loop body
LE: loop exit
PB: predicated region body
PF: predicated region fallthrough
CT: control target
= control target key end

     0   :  { %s4036_s0 = inlined_call_operand.vmem [shape: bf16[2,3200], index: 0, kind: input, shape index: {}]   ;;  %s4037_s1 = inlined_call_operand.vmem [shape: bf16[3200,128], index: 1, kind: input, shape index: {}]   ;;  %s4038_s2 = inlined_call_operand.vmem [shape: f32[1,128], index: 2, kind: input, shape index: {}]   ;;  %s4039_s3 = inlined_call_operand.vmem [shape: bf16[128,128], index: 3, kind: input, shape index: {}]   ;;  %s4040_s4 = inlined_call_operand.vmem [shape: f32[1,128], index: 4, kind: input, shape index: {}]   ;;  %s4041_s5 = inlined_call_operand.vmem [shape: bf16[128,128], index: 5, kind: input, shape index: {}]   ;;  %s4042_s6 = inlined_call_operand.vmem [shape: f32[1,128], index: 6, kind: input, shape index: {}]   ;;  %s4043_s7 = inlined_call_operand.hbm [shape: f32[2,128], index: 7, kind: output, shape index: {}]  }
   0x1   :  { %v3072_v0 = vld [vmem:[%s4037_s1 + $0x38] sm:$0xff]  ;;  %v3071_v4 = vld [vmem:[%s4037_s1 + $0x30] sm:$0xff]  ;;  %v3070_v8 = vld [vmem:[%s4037_s1 + $0x28] sm:$0xff] }
   0x2   :  { %v3088_v1 = vld [vmem:[%s4037_s1 + $0xb8] sm:$0xff]  ;;  %1693 = vmatpush.bf16.msra.mxu0 %v3072_v0  ;;  %v3087_v5 = vld [vmem:[%s4037_s1 + $0xb0] sm:$0xff]  ;;  %v3086_v9 = vld [vmem:[%s4037_s1 + $0xa8] sm:$0xff] }
   0x3   :  { %v3080_v2 = vld [vmem:[%s4037_s1 + $0x78] sm:$0xff]  ;;  %1719 = vmatpush.bf16.msra.mxu2 %v3088_v1  ;;  %v3079_v6 = vld [vmem:[%s4037_s1 + $0x70] sm:$0xff]  ;;  %v3078_v10 = vld [vmem:[%s4037_s1 + $0x68] sm:$0xff] }
   0x4   :  { %v3096_v3 = vld [vmem:[%s4037_s1 + $0xf8] sm:$0xff]  ;;  %1706 = vmatpush.bf16.msra.mxu1 %v3080_v2  ;;  %v3095_v7 = vld [vmem:[%s4037_s1 + $0xf0] sm:$0xff]  ;;  %v3094_v11 = vld [vmem:[%s4037_s1 + $0xe8] sm:$0xff] }
   0x5   :  { %1732 = vmatpush.bf16.msra.mxu3 %v3096_v3  ;;  %v3069_v12 = vld [vmem:[%s4037_s1 + $0x20] sm:$0xff]  ;;  %v3068_v16 = vld [vmem:[%s4037_s1 + $0x18] sm:$0xff]  ;;  %v3067_v21 = vld [vmem:[%s4037_s1 + $0x10] sm:$0xff] }
   0x6   :  { %1694 = vmatpush.bf16.msra.mxu0 %v3071_v4  ;;  %v3085_v13 = vld [vmem:[%s4037_s1 + $0xa0] sm:$0xff]  ;;  %v3084_v17 = vld [vmem:[%s4037_s1 + $0x98] sm:$0xff]  ;;  %v3083_v22 = vld [vmem:[%s4037_s1 + $0x90] sm:$0xff] }
   0x7   :  { %1720 = vmatpush.bf16.msra.mxu2 %v3087_v5  ;;  %v3077_v14 = vld [vmem:[%s4037_s1 + $0x60] sm:$0xff]  ;;  %v3076_v18 = vld [vmem:[%s4037_s1 + $0x58] sm:$0xff]  ;;  %v3075_v23 = vld [vmem:[%s4037_s1 + $0x50] sm:$0xff] }
   0x8   :  { %1707 = vmatpush.bf16.msra.mxu1 %v3079_v6  ;;  %v3093_v15 = vld [vmem:[%s4037_s1 + $0xe0] sm:$0xff]  ;;  %v3092_v19 = vld [vmem:[%s4037_s1 + $0xd8] sm:$0xff]  ;;  %v3091_v24 = vld [vmem:[%s4037_s1 + $0xd0] sm:$0xff] }
   0x9   :  { %1733 = vmatpush.bf16.msra.mxu3 %v3095_v7  ;;  %v27_v20 = vld [vmem:[%s4036_s0] sm:$0xff] }
   0xa   :  { %1695 = vmatpush.bf16.msra.mxu0 %v3070_v8  ;;  %436 = vst [vmem:[#allocation1] ss:$9 sm:$0xff] %v27_v20 }
   0xb   :  { %1721 = vmatpush.bf16.msra.mxu2 %v3086_v9 }
   0xc   :  { %1708 = vmatpush.bf16.msra.mxu1 %v3078_v10 }
   0xd   :  { %1734 = vmatpush.bf16.msra.mxu3 %v3094_v11 }
   0xe   :  { %1696 = vmatpush.bf16.msra.mxu0 %v3069_v12 }
   0xf   :  { %1722 = vmatpush.bf16.msra.mxu2 %v3085_v13 }
  0x10   :  { %1709 = vmatpush.bf16.msra.mxu1 %v3077_v14 }
  0x11   :  { %1735 = vmatpush.bf16.msra.mxu3 %v3093_v15 }
  0x12   :  { %1697 = vmatpush.bf16.msra.mxu0 %v3068_v16 }
  0x13   :  { %1723 = vmatpush.bf16.msra.mxu2 %v3084_v17 }
  0x14   :  { %1710 = vmatpush.bf16.msra.mxu1 %v3076_v18 }
  0x15   :  { %1736 = vmatpush.bf16.msra.mxu3 %v3092_v19 }
  0x16   :  { %12 = vsyncpa [#allocation3], 0  ;;  %1698 = vmatpush.bf16.msra.mxu0 %v3067_v21  ;;  %v3066_v25 = vld [vmem:[%s4037_s1 + $0x8] sm:$0xff]  ;;  %v3065_v29 = vld [vmem:[%s4037_s1] sm:$0xff]  ;;  %s3311_s23 = smov [#allocation2]  }
  0x17   :  { %1724 = vmatpush.bf16.msra.mxu2 %v3083_v22  ;;  %v3082_v26 = vld [vmem:[%s4037_s1 + $0x88] sm:$0xff]  ;;  %v3081_v30 = vld [vmem:[%s4037_s1 + $0x80] sm:$0xff]  ;;  %v3104_v31 = vld [vmem:[%s4037_s1 + $0x138] sm:$0xff]  ;;  %s2190_s24 = sshll.u32 %s3311_s23, 4  ;;  %s2191_s24 = int_to_ptr.vmem [resolvable:$true] %s2190_s24 }
  0x18   :  { %1711 = vmatpush.bf16.msra.mxu1 %v3075_v23  ;;  %v3074_v27 = vld [vmem:[%s4037_s1 + $0x48] sm:$0xff]  ;;  %v3120_v32 = vld [vmem:[%s4037_s1 + $0x1b8] sm:$0xff]  ;;  %v3073_v33 = vld [vmem:[%s4037_s1 + $0x40] sm:$0xff] }
  0x19   :  { %1737 = vmatpush.bf16.msra.mxu3 %v3091_v24  ;;  %v3090_v28 = vld [vmem:[%s4037_s1 + $0xc8] sm:$0xff]  ;;  %v3089_v34 = vld [vmem:[%s4037_s1 + $0xc0] sm:$0xff]  ;;  %v3112_v35 = vld [vmem:[%s4037_s1 + $0x178] sm:$0xff] }
  0x1a   :  { %1699 = vmatpush.bf16.msra.mxu0 %v3066_v25  ;;  %v3128_v36 = vld [vmem:[%s4037_s1 + $0x1f8] sm:$0xff]  ;;  %v3103_v37 = vld [vmem:[%s4037_s1 + $0x130] sm:$0xff]  ;;  %v437_v40 = vld [vmem:[#allocation1] sm:$0xff] }
  0x1b   :  { %1725 = vmatpush.bf16.msra.mxu2 %v3082_v26  ;;  %v3119_v38 = vld [vmem:[%s4037_s1 + $0x1b0] sm:$0xff]  ;;  %v440_v43 = vld [vmem:[#allocation1 + $0x1b] sm:$0xff]  ;;  %v3102_v45 = vld [vmem:[%s4037_s1 + $0x128] sm:$0xff] }
  0x1c   :  { %1712 = vmatpush.bf16.msra.mxu1 %v3074_v27  ;;  %v439_v39 = vld [vmem:[#allocation1 + $0x12] sm:$0xff]  ;;  %v438_v44 = vld [vmem:[#allocation1 + $0x9] sm:$0xff]  ;;  %v3485_v49 = vld [vmem:[#allocation1 + $0x3f] sm:$0xff] }
  0x1d   :  { %1738 = vmatpush.bf16.msra.mxu3 %v3090_v28  ;;  %v3111_v41 = vld [vmem:[%s4037_s1 + $0x170] sm:$0xff]  ;;  %v3118_v46 = vld [vmem:[%s4037_s1 + $0x1a8] sm:$0xff]  ;;  %v3101_v54 = vld [vmem:[%s4037_s1 + $0x120] sm:$0xff] }
  0x1e   :  { %1700 = vmatpush.bf16.msra.mxu0 %v3065_v29  ;;  %v3127_v42 = vld [vmem:[%s4037_s1 + $0x1f0] sm:$0xff]  ;;  %v3483_v48 = vld [vmem:[#allocation1 + $0x24] sm:$0xff]  ;;  %v3100_v58 = vld [vmem:[%s4037_s1 + $0x118] sm:$0xff] }
  0x1f   :  { %1726 = vmatpush.bf16.msra.mxu2 %v3081_v30  ;;  %v3481_v47 = vld [vmem:[#allocation1 + $0x36] sm:$0xff]  ;;  %v28_v50 = vld [vmem:[%s4036_s0 + $0x8] sm:$0xff]  ;;  %v3117_v55 = vld [vmem:[%s4037_s1 + $0x1a0] sm:$0xff] }
  0x20   :  { %1713 = vmatpush.bf16.msra.mxu1 %v3073_v33  ;;  %v3490_v51 = vld [vmem:[#allocation1 + $0x2d] sm:$0xff]  ;;  %v3109_v56 = vld [vmem:[%s4037_s1 + $0x160] sm:$0xff]  ;;  %v3116_v59 = vld [vmem:[%s4037_s1 + $0x198] sm:$0xff] }
  0x21   :  { %1739 = vmatpush.bf16.msra.mxu3 %v3089_v34  ;;  %1701 = vmatmul.bf16.vlgmr.msra.gmra.mxu0 %v437_v40  ;;  %v3110_v52 = vld [vmem:[%s4037_s1 + $0x168] sm:$0xff]  ;;  %446 = vst [vmem:[#allocation1] ss:$9 sm:$0xff] %v28_v50  ;;  %v3125_v57 = vld [vmem:[%s4037_s1 + $0x1e0] sm:$0xff]  ;;  %v3108_v60 = vld [vmem:[%s4037_s1 + $0x158] sm:$0xff] }
  0x22   :  { %1745 = vmatpush.bf16.msrb.mxu0 %v3104_v31  ;;  %1727 = vmatmul.bf16.vlgmr.msra.gmra.mxu2 %v439_v39  ;;  %v3126_v53 = vld [vmem:[%s4037_s1 + $0x1e8] sm:$0xff]  ;;  %v3124_v61 = vld [vmem:[%s4037_s1 + $0x1d8] sm:$0xff]  ;;  %v3099_v62 = vld [vmem:[%s4037_s1 + $0x110] sm:$0xff] }
  0x23   :  { %1771 = vmatpush.bf16.msrb.mxu2 %v3120_v32  ;;  %1714 = vmatmul.bf16.vlgmr.msra.gmra.mxu1 %v438_v44  ;;  %v3115_v63 = vld [vmem:[%s4037_s1 + $0x190] sm:$0xff]  ;;  %v3098_v2 = vld [vmem:[%s4037_s1 + $0x108] sm:$0xff]  ;;  %v3097_v6 = vld [vmem:[%s4037_s1 + $0x100] sm:$0xff] }
  0x24   :  { %1758 = vmatpush.bf16.msrb.mxu1 %v3112_v35  ;;  %1740 = vmatmul.bf16.vlgmr.msra.gmra.mxu3 %v440_v43  ;;  %v3107_v0 = vld [vmem:[%s4037_s1 + $0x150] sm:$0xff]  ;;  %v3114_v3 = vld [vmem:[%s4037_s1 + $0x188] sm:$0xff]  ;;  %v3113_v7 = vld [vmem:[%s4037_s1 + $0x180] sm:$0xff] }
  0x25   :  { %1784 = vmatpush.bf16.msrb.mxu3 %v3128_v36  ;;  %v3123_v1 = vld [vmem:[%s4037_s1 + $0x1d0] sm:$0xff]  ;;  %v3106_v4 = vld [vmem:[%s4037_s1 + $0x148] sm:$0xff]  ;;  %v3136_v8 = vld [vmem:[%s4037_s1 + $0x238] sm:$0xff] }
  0x26   :  { %1746 = vmatpush.bf16.msrb.mxu0 %v3103_v37  ;;  %v3122_v5 = vld [vmem:[%s4037_s1 + $0x1c8] sm:$0xff]  ;;  %v3152_v9 = vld [vmem:[%s4037_s1 + $0x2b8] sm:$0xff]  ;;  %v3105_v10 = vld [vmem:[%s4037_s1 + $0x140] sm:$0xff] }
  0x27   :  { %1772 = vmatpush.bf16.msrb.mxu2 %v3119_v38  ;;  %v3121_v11 = vld [vmem:[%s4037_s1 + $0x1c0] sm:$0xff]  ;;  %v3144_v12 = vld [vmem:[%s4037_s1 + $0x278] sm:$0xff]  ;;  %v3135_v14 = vld [vmem:[%s4037_s1 + $0x230] sm:$0xff] }
  0x28   :  { %1759 = vmatpush.bf16.msrb.mxu1 %v3111_v41  ;;  %v3160_v13 = vld [vmem:[%s4037_s1 + $0x2f8] sm:$0xff]  ;;  %v3151_v15 = vld [vmem:[%s4037_s1 + $0x2b0] sm:$0xff]  ;;  %v3134_v18 = vld [vmem:[%s4037_s1 + $0x228] sm:$0xff] }
  0x29   :  { %1785 = vmatpush.bf16.msrb.mxu3 %v3127_v42  ;;  %v3143_v16 = vld [vmem:[%s4037_s1 + $0x270] sm:$0xff]  ;;  %v3150_v19 = vld [vmem:[%s4037_s1 + $0x2a8] sm:$0xff]  ;;  %v3133_v22 = vld [vmem:[%s4037_s1 + $0x220] sm:$0xff] }
  0x2a   :  { %1747 = vmatpush.bf16.msrb.mxu0 %v3102_v45  ;;  %v3159_v17 = vld [vmem:[%s4037_s1 + $0x2f0] sm:$0xff]  ;;  %v3142_v20 = vld [vmem:[%s4037_s1 + $0x268] sm:$0xff]  ;;  %v3149_v23 = vld [vmem:[%s4037_s1 + $0x2a0] sm:$0xff] }
  0x2b   :  { %1773 = vmatpush.bf16.msrb.mxu2 %v3118_v46  ;;  %v3158_v21 = vld [vmem:[%s4037_s1 + $0x2e8] sm:$0xff]  ;;  %v3141_v24 = vld [vmem:[%s4037_s1 + $0x260] sm:$0xff]  ;;  %v3132_v26 = vld [vmem:[%s4037_s1 + $0x218] sm:$0xff] }
  0x2c   :  { %1760 = vmatpush.bf16.msrb.mxu1 %v3110_v52  ;;  %v3157_v25 = vld [vmem:[%s4037_s1 + $0x2e0] sm:$0xff]  ;;  %v3148_v27 = vld [vmem:[%s4037_s1 + $0x298] sm:$0xff]  ;;  %v3131_v30 = vld [vmem:[%s4037_s1 + $0x210] sm:$0xff] }
  0x2d   :  { %1786 = vmatpush.bf16.msrb.mxu3 %v3126_v53  ;;  %v3140_v28 = vld [vmem:[%s4037_s1 + $0x258] sm:$0xff]  ;;  %v3147_v31 = vld [vmem:[%s4037_s1 + $0x290] sm:$0xff]  ;;  %v3130_v34 = vld [vmem:[%s4037_s1 + $0x208] sm:$0xff] }
  0x2e   :  { %1748 = vmatpush.bf16.msrb.mxu0 %v3101_v54  ;;  %v3156_v29 = vld [vmem:[%s4037_s1 + $0x2d8] sm:$0xff]  ;;  %v3139_v32 = vld [vmem:[%s4037_s1 + $0x250] sm:$0xff]  ;;  %v3146_v35 = vld [vmem:[%s4037_s1 + $0x288] sm:$0xff] }
  0x2f   :  { %1774 = vmatpush.bf16.msrb.mxu2 %v3117_v55  ;;  %v3155_v33 = vld [vmem:[%s4037_s1 + $0x2d0] sm:$0xff]  ;;  %v3138_v36 = vld [vmem:[%s4037_s1 + $0x248] sm:$0xff]  ;;  %v3129_v38 = vld [vmem:[%s4037_s1 + $0x200] sm:$0xff] }
  0x30   :  { %1761 = vmatpush.bf16.msrb.mxu1 %v3109_v56  ;;  %v3154_v37 = vld [vmem:[%s4037_s1 + $0x2c8] sm:$0xff]  ;;  %v3145_v39 = vld [vmem:[%s4037_s1 + $0x280] sm:$0xff]  ;;  %v3168_v40 = vld [vmem:[%s4037_s1 + $0x338] sm:$0xff] }
  0x31   :  { %1787 = vmatpush.bf16.msrb.mxu3 %v3125_v57  ;;  %v3184_v41 = vld [vmem:[%s4037_s1 + $0x3b8] sm:$0xff]  ;;  %v3137_v42 = vld [vmem:[%s4037_s1 + $0x240] sm:$0xff]  ;;  %v3167_v50 = vld [vmem:[%s4037_s1 + $0x330] sm:$0xff] }
  0x32   :  { %1749 = vmatpush.bf16.msrb.mxu0 %v3100_v58  ;;  %v3153_v43 = vld [vmem:[%s4037_s1 + $0x2c0] sm:$0xff]  ;;  %v3176_v44 = vld [vmem:[%s4037_s1 + $0x378] sm:$0xff]  ;;  %v3175_v52 = vld [vmem:[%s4037_s1 + $0x370] sm:$0xff] }
  0x33   :  { %1775 = vmatpush.bf16.msrb.mxu2 %v3116_v59  ;;  %v447_v45 = vld [vmem:[#allocation1] sm:$0xff]  ;;  %v449_v46 = vld [vmem:[#allocation1 + $0x12] sm:$0xff]  ;;  %v3166_v54 = vld [vmem:[%s4037_s1 + $0x328] sm:$0xff] }
  0x34   :  { %1762 = vmatpush.bf16.msrb.mxu1 %v3108_v60  ;;  %v3191_v53 = vld [vmem:[%s4037_s1 + $0x3f0] sm:$0xff]  ;;  %v3182_v55 = vld [vmem:[%s4037_s1 + $0x3a8] sm:$0xff]  ;;  %v3165_v58 = vld [vmem:[%s4037_s1 + $0x320] sm:$0xff] }
  0x35   :  { %1788 = vmatpush.bf16.msrb.mxu3 %v3124_v61  ;;  %v3174_v56 = vld [vmem:[%s4037_s1 + $0x368] sm:$0xff]  ;;  %v3181_v59 = vld [vmem:[%s4037_s1 + $0x3a0] sm:$0xff] }
  0x36   :  { %1750 = vmatpush.bf16.msrb.mxu0 %v3099_v62  ;;  %v3190_v57 = vld [vmem:[%s4037_s1 + $0x3e8] sm:$0xff]  ;;  %v3173_v60 = vld [vmem:[%s4037_s1 + $0x360] sm:$0xff]  ;;  %v3164_v62 = vld [vmem:[%s4037_s1 + $0x318] sm:$0xff] }
  0x37   :  { %1776 = vmatpush.bf16.msrb.mxu2 %v3115_v63  ;;  %v3189_v61 = vld [vmem:[%s4037_s1 + $0x3e0] sm:$0xff]  ;;  %v3180_v63 = vld [vmem:[%s4037_s1 + $0x398] sm:$0xff] }
  0x38   :  { %1763 = vmatpush.bf16.msrb.mxu1 %v3107_v0  ;;  %v3172_v0 = vld [vmem:[%s4037_s1 + $0x358] sm:$0xff] }
  0x39   :  { %1789 = vmatpush.bf16.msrb.mxu3 %v3123_v1  ;;  %v3188_v1 = vld [vmem:[%s4037_s1 + $0x3d8] sm:$0xff] }
  0x3a   :  { %1751 = vmatpush.bf16.msrb.mxu0 %v3098_v2  ;;  %v3163_v2 = vld [vmem:[%s4037_s1 + $0x310] sm:$0xff] }
  0x3b   :  { %1777 = vmatpush.bf16.msrb.mxu2 %v3114_v3  ;;  %v3179_v3 = vld [vmem:[%s4037_s1 + $0x390] sm:$0xff] }
  0x3c   :  { %1764 = vmatpush.bf16.msrb.mxu1 %v3106_v4  ;;  %v3171_v4 = vld [vmem:[%s4037_s1 + $0x350] sm:$0xff] }
  0x3d   :  { %1790 = vmatpush.bf16.msrb.mxu3 %v3122_v5  ;;  %v3187_v5 = vld [vmem:[%s4037_s1 + $0x3d0] sm:$0xff] }
  0x3e   :  { %1752 = vmatpush.bf16.msrb.mxu0 %v3097_v6  ;;  %v3162_v6 = vld [vmem:[%s4037_s1 + $0x308] sm:$0xff] }
  0x3f   :  { %1778 = vmatpush.bf16.msrb.mxu2 %v3113_v7  ;;  %v3178_v7 = vld [vmem:[%s4037_s1 + $0x388] sm:$0xff] }
  0x40   :  { %1765 = vmatpush.bf16.msrb.mxu1 %v3105_v10  ;;  %v452_v10 = vld [vmem:[#allocation1 + $0x2d] sm:$0xff] }
  0x41   :  { %1791 = vmatpush.bf16.msrb.mxu3 %v3121_v11  ;;  %1753 = vmatmul.bf16.vlgmr.msrb.gmra.mxu0 %v3483_v48  ;;  %v448_v48 = vld [vmem:[#allocation1 + $0x9] sm:$0xff]  ;;  %v454_v11 = vld [vmem:[#allocation1 + $0x3f] sm:$0xff] }
  0x42   :  { %1797 = vmatpush.bf16.msra.mxu0 %v3136_v8  ;;  %1779 = vmatmul.bf16.vlgmr.msrb.gmra.mxu2 %v3481_v47  ;;  %v3192_v47 = vld [vmem:[%s4037_s1 + $0x3f8] sm:$0xff]  ;;  %v451_v8 = vld [vmem:[#allocation1 + $0x24] sm:$0xff] }
  0x43   :  { %1823 = vmatpush.bf16.msra.mxu2 %v3152_v9  ;;  %1766 = vmatmul.bf16.vlgmr.msrb.gmra.mxu1 %v3490_v51  ;;  %v3183_v51 = vld [vmem:[%s4037_s1 + $0x3b0] sm:$0xff] }
  0x44   :  { %1810 = vmatpush.bf16.msra.mxu1 %v3144_v12  ;;  %1792 = vmatmul.bf16.vlgmr.msrb.gmra.mxu3 %v3485_v49  ;;  %v450_v49 = vld [vmem:[#allocation1 + $0x1b] sm:$0xff]  ;;  %v29_v12 = vld [vmem:[%s4036_s0 + $0x10] sm:$0xff] }
  0x45   :  { %1836 = vmatpush.bf16.msra.mxu3 %v3160_v13  ;;  %v453_v9 = vld [vmem:[#allocation1 + $0x36] sm:$0xff]  ;;  %v3170_v13 = vld [vmem:[%s4037_s1 + $0x348] sm:$0xff] }
  0x46   :  { %1798 = vmatpush.bf16.msra.mxu0 %v3135_v14  ;;  %456 = vst [vmem:[#allocation1] ss:$9 sm:$0xff] %v29_v12  ;;  %v3186_v14 = vld [vmem:[%s4037_s1 + $0x3c8] sm:$0xff]  ;;  %v3244_v12 = vld [vmem:[%s4037_s1 + $0x598] sm:$0xff] }
  0x47   :  { %1824 = vmatpush.bf16.msra.mxu2 %v3151_v15  ;;  %v3161_v15 = vld [vmem:[%s4037_s1 + $0x300] sm:$0xff] }
  0x48   :  { %1811 = vmatpush.bf16.msra.mxu1 %v3143_v16  ;;  %v3177_v16 = vld [vmem:[%s4037_s1 + $0x380] sm:$0xff] }
  0x49   :  { %1837 = vmatpush.bf16.msra.mxu3 %v3159_v17  ;;  %v3200_v17 = vld [vmem:[%s4037_s1 + $0x438] sm:$0xff] }
  0x4a   :  { %1799 = vmatpush.bf16.msra.mxu0 %v3134_v18  ;;  %v3216_v18 = vld [vmem:[%s4037_s1 + $0x4b8] sm:$0xff] }
  0x4b   :  { %1825 = vmatpush.bf16.msra.mxu2 %v3150_v19  ;;  %v3169_v19 = vld [vmem:[%s4037_s1 + $0x340] sm:$0xff] }
  0x4c   :  { %1812 = vmatpush.bf16.msra.mxu1 %v3142_v20  ;;  %v3185_v20 = vld [vmem:[%s4037_s1 + $0x3c0] sm:$0xff] }
  0x4d   :  { %1838 = vmatpush.bf16.msra.mxu3 %v3158_v21  ;;  %v3208_v21 = vld [vmem:[%s4037_s1 + $0x478] sm:$0xff] }
  0x4e   :  { %1800 = vmatpush.bf16.msra.mxu0 %v3133_v22  ;;  %v3224_v22 = vld [vmem:[%s4037_s1 + $0x4f8] sm:$0xff] }
  0x4f   :  { %1826 = vmatpush.bf16.msra.mxu2 %v3149_v23  ;;  %v3199_v23 = vld [vmem:[%s4037_s1 + $0x430] sm:$0xff] }
  0x50   :  { %1813 = vmatpush.bf16.msra.mxu1 %v3141_v24  ;;  %v3215_v24 = vld [vmem:[%s4037_s1 + $0x4b0] sm:$0xff] }
  0x51   :  { %1839 = vmatpush.bf16.msra.mxu3 %v3157_v25  ;;  %v3207_v25 = vld [vmem:[%s4037_s1 + $0x470] sm:$0xff] }
  0x52   :  { %1801 = vmatpush.bf16.msra.mxu0 %v3132_v26  ;;  %v3223_v26 = vld [vmem:[%s4037_s1 + $0x4f0] sm:$0xff] }
  0x53   :  { %1827 = vmatpush.bf16.msra.mxu2 %v3148_v27  ;;  %v3198_v27 = vld [vmem:[%s4037_s1 + $0x428] sm:$0xff] }
  0x54   :  { %1814 = vmatpush.bf16.msra.mxu1 %v3140_v28  ;;  %v3214_v28 = vld [vmem:[%s4037_s1 + $0x4a8] sm:$0xff] }
  0x55   :  { %1840 = vmatpush.bf16.msra.mxu3 %v3156_v29  ;;  %v3206_v29 = vld [vmem:[%s4037_s1 + $0x468] sm:$0xff] }
  0x56   :  { %1802 = vmatpush.bf16.msra.mxu0 %v3131_v30  ;;  %v3222_v30 = vld [vmem:[%s4037_s1 + $0x4e8] sm:$0xff] }
  0x57   :  { %1828 = vmatpush.bf16.msra.mxu2 %v3147_v31  ;;  %v3197_v31 = vld [vmem:[%s4037_s1 + $0x420] sm:$0xff] }
  0x58   :  { %1815 = vmatpush.bf16.msra.mxu1 %v3139_v32  ;;  %v3213_v32 = vld [vmem:[%s4037_s1 + $0x4a0] sm:$0xff] }
  0x59   :  { %1841 = vmatpush.bf16.msra.mxu3 %v3155_v33  ;;  %v3205_v33 = vld [vmem:[%s4037_s1 + $0x460] sm:$0xff] }
  0x5a   :  { %1803 = vmatpush.bf16.msra.mxu0 %v3130_v34  ;;  %v3221_v34 = vld [vmem:[%s4037_s1 + $0x4e0] sm:$0xff] }
  0x5b   :  { %1829 = vmatpush.bf16.msra.mxu2 %v3146_v35  ;;  %v3196_v35 = vld [vmem:[%s4037_s1 + $0x418] sm:$0xff] }
  0x5c   :  { %1816 = vmatpush.bf16.msra.mxu1 %v3138_v36  ;;  %v3212_v36 = vld [vmem:[%s4037_s1 + $0x498] sm:$0xff] }
  0x5d   :  { %1842 = vmatpush.bf16.msra.mxu3 %v3154_v37  ;;  %v3204_v37 = vld [vmem:[%s4037_s1 + $0x458] sm:$0xff] }
  0x5e   :  { %1804 = vmatpush.bf16.msra.mxu0 %v3129_v38  ;;  %v3220_v38 = vld [vmem:[%s4037_s1 + $0x4d8] sm:$0xff] }
  0x5f   :  { %1830 = vmatpush.bf16.msra.mxu2 %v3145_v39  ;;  %v3195_v39 = vld [vmem:[%s4037_s1 + $0x410] sm:$0xff] }
  0x60   :  { %1817 = vmatpush.bf16.msra.mxu1 %v3137_v42  ;;  %v3219_v42 = vld [vmem:[%s4037_s1 + $0x4d0] sm:$0xff] }
  0x61   :  { %1843 = vmatpush.bf16.msra.mxu3 %v3153_v43  ;;  %1805 = vmatmul.bf16.vlgmr.msra.gmra.mxu0 %v447_v45  ;;  %v3194_v43 = vld [vmem:[%s4037_s1 + $0x408] sm:$0xff] }
  0x62   :  { %1849 = vmatpush.bf16.msrb.mxu0 %v3168_v40  ;;  %1831 = vmatmul.bf16.vlgmr.msra.gmra.mxu2 %v449_v46  ;;  %v3211_v40 = vld [vmem:[%s4037_s1 + $0x490] sm:$0xff]  ;;  %v3202_v45 = vld [vmem:[%s4037_s1 + $0x448] sm:$0xff] }
  0x63   :  { %1875 = vmatpush.bf16.msrb.mxu2 %v3184_v41  ;;  %1818 = vmatmul.bf16.vlgmr.msra.gmra.mxu1 %v448_v48  ;;  %v3203_v41 = vld [vmem:[%s4037_s1 + $0x450] sm:$0xff]  ;;  %v3218_v46 = vld [vmem:[%s4037_s1 + $0x4c8] sm:$0xff]  ;;  %v3209_v48 = vld [vmem:[%s4037_s1 + $0x480] sm:$0xff] }
  0x64   :  { %1862 = vmatpush.bf16.msrb.mxu1 %v3176_v44  ;;  %1844 = vmatmul.bf16.vlgmr.msra.gmra.mxu3 %v450_v49  ;;  %v3210_v44 = vld [vmem:[%s4037_s1 + $0x488] sm:$0xff]  ;;  %v3232_v49 = vld [vmem:[%s4037_s1 + $0x538] sm:$0xff] }
  0x65   :  { %1888 = vmatpush.bf16.msrb.mxu3 %v3192_v47  ;;  %v3193_v47 = vld [vmem:[%s4037_s1 + $0x400] sm:$0xff] }
  0x66   :  { %1850 = vmatpush.bf16.msrb.mxu0 %v3167_v50  ;;  %v3248_v50 = vld [vmem:[%s4037_s1 + $0x5b8] sm:$0xff] }
  0x67   :  { %1876 = vmatpush.bf16.msrb.mxu2 %v3183_v51  ;;  %v3201_v51 = vld [vmem:[%s4037_s1 + $0x440] sm:$0xff] }
  0x68   :  { %1863 = vmatpush.bf16.msrb.mxu1 %v3175_v52  ;;  %v3217_v52 = vld [vmem:[%s4037_s1 + $0x4c0] sm:$0xff] }
  0x69   :  { %1889 = vmatpush.bf16.msrb.mxu3 %v3191_v53  ;;  %v3240_v53 = vld [vmem:[%s4037_s1 + $0x578] sm:$0xff] }
  0x6a   :  { %1851 = vmatpush.bf16.msrb.mxu0 %v3166_v54  ;;  %v457_v54 = vld [vmem:[#allocation1] sm:$0xff] }
  0x6b   :  { %1877 = vmatpush.bf16.msrb.mxu2 %v3182_v55  ;;  %v459_v55 = vld [vmem:[#allocation1 + $0x12] sm:$0xff] }
  0x6c   :  { %1864 = vmatpush.bf16.msrb.mxu1 %v3174_v56  ;;  %v3256_v56 = vld [vmem:[%s4037_s1 + $0x5f8] sm:$0xff] }
  0x6d   :  { %1890 = vmatpush.bf16.msrb.mxu3 %v3190_v57  ;;  %v458_v57 = vld [vmem:[#allocation1 + $0x9] sm:$0xff] }
  0x6e   :  { %1852 = vmatpush.bf16.msrb.mxu0 %v3165_v58  ;;  %v460_v58 = vld [vmem:[#allocation1 + $0x1b] sm:$0xff] }
  0x6f   :  { %1878 = vmatpush.bf16.msrb.mxu2 %v3181_v59  ;;  %v3231_v59 = vld [vmem:[%s4037_s1 + $0x530] sm:$0xff] }
  0x70   :  { %1865 = vmatpush.bf16.msrb.mxu1 %v3173_v60  ;;  %v3247_v60 = vld [vmem:[%s4037_s1 + $0x5b0] sm:$0xff] }
  0x71   :  { %1891 = vmatpush.bf16.msrb.mxu3 %v3189_v61  ;;  %v3239_v61 = vld [vmem:[%s4037_s1 + $0x570] sm:$0xff] }
  0x72   :  { %1853 = vmatpush.bf16.msrb.mxu0 %v3164_v62  ;;  %v3255_v62 = vld [vmem:[%s4037_s1 + $0x5f0] sm:$0xff] }
  0x73   :  { %1879 = vmatpush.bf16.msrb.mxu2 %v3180_v63  ;;  %v3230_v63 = vld [vmem:[%s4037_s1 + $0x528] sm:$0xff] }
  0x74   :  { %1866 = vmatpush.bf16.msrb.mxu1 %v3172_v0  ;;  %v3246_v0 = vld [vmem:[%s4037_s1 + $0x5a8] sm:$0xff] }
  0x75   :  { %1892 = vmatpush.bf16.msrb.mxu3 %v3188_v1  ;;  %v3238_v1 = vld [vmem:[%s4037_s1 + $0x568] sm:$0xff] }
  0x76   :  { %1854 = vmatpush.bf16.msrb.mxu0 %v3163_v2  ;;  %v3254_v2 = vld [vmem:[%s4037_s1 + $0x5e8] sm:$0xff] }
  0x77   :  { %1880 = vmatpush.bf16.msrb.mxu2 %v3179_v3  ;;  %v3282_v3 = vld [vmem:[%s4038_s2] ss:$0 sm:$0xff] }
  0x78   :  { %1867 = vmatpush.bf16.msrb.mxu1 %v3171_v4  ;;  %v3229_v4 = vld [vmem:[%s4037_s1 + $0x520] sm:$0xff] }
  0x79   :  { %1893 = vmatpush.bf16.msrb.mxu3 %v3187_v5  ;;  %v3245_v5 = vld [vmem:[%s4037_s1 + $0x5a0] sm:$0xff] }
  0x7a   :  { %1855 = vmatpush.bf16.msrb.mxu0 %v3162_v6 }
  0x7b   :  { %1881 = vmatpush.bf16.msrb.mxu2 %v3178_v7  ;;  %v3237_v7 = vld [vmem:[%s4037_s1 + $0x560] sm:$0xff] }
  0x7c   :  { %1868 = vmatpush.bf16.msrb.mxu1 %v3170_v13 }
  0x7d   :  { %1894 = vmatpush.bf16.msrb.mxu3 %v3186_v14  ;;  %v3236_v14 = vld [vmem:[%s4037_s1 + $0x558] sm:$0xff] }
  0x7e   :  { %1856 = vmatpush.bf16.msrb.mxu0 %v3161_v15  ;;  %v3252_v15 = vld [vmem:[%s4037_s1 + $0x5d8] sm:$0xff] }
  0x7f   :  { %1882 = vmatpush.bf16.msrb.mxu2 %v3177_v16 }
  0x80   :  { %1869 = vmatpush.bf16.msrb.mxu1 %v3169_v19 }
  0x81   :  { %1895 = vmatpush.bf16.msrb.mxu3 %v3185_v20  ;;  %1857 = vmatmul.bf16.vlgmr.msrb.gmra.mxu0 %v451_v8  ;;  %v3253_v8 = vld [vmem:[%s4037_s1 + $0x5e0] sm:$0xff] }
  0x82   :  { %1901 = vmatpush.bf16.msra.mxu0 %v3200_v17  ;;  %1883 = vmatmul.bf16.vlgmr.msrb.gmra.mxu2 %v453_v9  ;;  %v3227_v17 = vld [vmem:[%s4037_s1 + $0x510] sm:$0xff] }
  0x83   :  { %1927 = vmatpush.bf16.msra.mxu2 %v3216_v18  ;;  %1870 = vmatmul.bf16.vlgmr.msrb.gmra.mxu1 %v452_v10  ;;  %v3243_v18 = vld [vmem:[%s4037_s1 + $0x590] sm:$0xff] }
  0x84   :  { %1914 = vmatpush.bf16.msra.mxu1 %v3208_v21  ;;  %1896 = vmatmul.bf16.vlgmr.msrb.gmra.mxu3 %v454_v11  ;;  %v3228_v11 = vld [vmem:[%s4037_s1 + $0x518] sm:$0xff] }
  0x85   :  { %1940 = vmatpush.bf16.msra.mxu3 %v3224_v22  ;;  %v3235_v22 = vld [vmem:[%s4037_s1 + $0x550] sm:$0xff] }
  0x86   :  { %1902 = vmatpush.bf16.msra.mxu0 %v3199_v23  ;;  %v3251_v23 = vld [vmem:[%s4037_s1 + $0x5d0] sm:$0xff] }
  0x87   :  { %1928 = vmatpush.bf16.msra.mxu2 %v3215_v24  ;;  %v3226_v24 = vld [vmem:[%s4037_s1 + $0x508] sm:$0xff] }
  0x88   :  { %1915 = vmatpush.bf16.msra.mxu1 %v3207_v25 }
  0x89   :  { %1941 = vmatpush.bf16.msra.mxu3 %v3223_v26  ;;  %v3242_v26 = vld [vmem:[%s4037_s1 + $0x588] sm:$0xff] }
  0x8a   :  { %1903 = vmatpush.bf16.msra.mxu0 %v3198_v27  ;;  %v461_v27 = vld [vmem:[#allocation1 + $0x24] sm:$0xff] }
  0x8b   :  { %1929 = vmatpush.bf16.msra.mxu2 %v3214_v28  ;;  %v463_v28 = vld [vmem:[#allocation1 + $0x36] sm:$0xff] }
  0x8c   :  { %1916 = vmatpush.bf16.msra.mxu1 %v3206_v29 }
  0x8d   :  { %1942 = vmatpush.bf16.msra.mxu3 %v3222_v30  ;;  %v462_v30 = vld [vmem:[#allocation1 + $0x2d] sm:$0xff] }
  0x8e   :  { %1904 = vmatpush.bf16.msra.mxu0 %v3197_v31  ;;  %v464_v31 = vld [vmem:[#allocation1 + $0x3f] sm:$0xff] }
  0x8f   :  { %1930 = vmatpush.bf16.msra.mxu2 %v3213_v32  ;;  %v30_v32 = vld [vmem:[%s4036_s0 + $0x18] sm:$0x1] }
  0x90   :  { %1917 = vmatpush.bf16.msra.mxu1 %v3205_v33  ;;  %466 = vst [vmem:[#allocation1] ss:$9 sm:$0xff] %v30_v32  ;;  %v3234_v33 = vld [vmem:[%s4037_s1 + $0x548] sm:$0xff] }
  0x91   :  { %1943 = vmatpush.bf16.msra.mxu3 %v3221_v34  ;;  %v3250_v34 = vld [vmem:[%s4037_s1 + $0x5c8] sm:$0xff] }
  0x92   :  { %1905 = vmatpush.bf16.msra.mxu0 %v3196_v35 }
  0x93   :  { %1931 = vmatpush.bf16.msra.mxu2 %v3212_v36  ;;  %v3225_v36 = vld [vmem:[%s4037_s1 + $0x500] sm:$0xff] }
  0x94   :  { %1918 = vmatpush.bf16.msra.mxu1 %v3204_v37  ;;  %v3241_v37 = vld [vmem:[%s4037_s1 + $0x580] sm:$0xff] }
  0x95   :  { %1944 = vmatpush.bf16.msra.mxu3 %v3220_v38  ;;  %v3264_v38 = vld [vmem:[%s4037_s1 + $0x638] sm:$0xff] }
  0x96   :  { %1906 = vmatpush.bf16.msra.mxu0 %v3195_v39 }
  0x97   :  { %1932 = vmatpush.bf16.msra.mxu2 %v3211_v40  ;;  %v3233_v40 = vld [vmem:[%s4037_s1 + $0x540] sm:$0xff] }
  0x98   :  { %1919 = vmatpush.bf16.msra.mxu1 %v3203_v41  ;;  %v3249_v41 = vld [vmem:[%s4037_s1 + $0x5c0] sm:$0xff] }
  0x99   :  { %1945 = vmatpush.bf16.msra.mxu3 %v3219_v42  ;;  %v3263_v42 = vld [vmem:[%s4037_s1 + $0x630] sm:$0xff] }
  0x9a   :  { %1907 = vmatpush.bf16.msra.mxu0 %v3194_v43  ;;  %v3262_v43 = vld [vmem:[%s4037_s1 + $0x628] sm:$0xff] }
  0x9b   :  { %1933 = vmatpush.bf16.msra.mxu2 %v3210_v44  ;;  %v3261_v44 = vld [vmem:[%s4037_s1 + $0x620] sm:$0xff] }
  0x9c   :  { %1920 = vmatpush.bf16.msra.mxu1 %v3202_v45 }
  0x9d   :  { %1946 = vmatpush.bf16.msra.mxu3 %v3218_v46 }
  0x9e   :  { %1908 = vmatpush.bf16.msra.mxu0 %v3193_v47  ;;  %v1702_v6 = vpop.f32.mrf.mxu0 }
  0x9f   :  { %1934 = vmatpush.bf16.msra.mxu2 %v3209_v48  ;;  %v1703_v9 = vadd.f32 %v3282_v3, %v1702_v6 }
  0xa0   :  { %1921 = vmatpush.bf16.msra.mxu1 %v3201_v51  ;;  %v1715_v10 = vpop.f32.mrf.mxu1 }
  0xa1   :  { %1947 = vmatpush.bf16.msra.mxu3 %v3217_v52  ;;  %1909 = vmatmul.bf16.vlgmr.msra.gmra.mxu0 %v457_v54  ;;  %v1716_v13 = vadd.f32 %v1715_v10, %v1703_v9  ;;  %v3259_v52 = vld [vmem:[%s4037_s1 + $0x610] sm:$0xff] }
  0xa2   :  { %1953 = vmatpush.bf16.msrb.mxu0 %v3232_v49  ;;  %1935 = vmatmul.bf16.vlgmr.msra.gmra.mxu2 %v459_v55  ;;  %v3260_v49 = vld [vmem:[%s4037_s1 + $0x618] sm:$0xff] }
  0xa3   :  { %1979 = vmatpush.bf16.msrb.mxu2 %v3248_v50  ;;  %1922 = vmatmul.bf16.vlgmr.msra.gmra.mxu1 %v458_v57  ;;  %v3258_v57 = vld [vmem:[%s4037_s1 + $0x608] sm:$0xff] }
  0xa4   :  { %1966 = vmatpush.bf16.msrb.mxu1 %v3240_v53  ;;  %1948 = vmatmul.bf16.vlgmr.msra.gmra.mxu3 %v460_v58 }
  0xa5   :  { %1992 = vmatpush.bf16.msrb.mxu3 %v3256_v56  ;;  %v1728_v16 = vpop.f32.mrf.mxu2 }
  0xa6   :  { %1954 = vmatpush.bf16.msrb.mxu0 %v3231_v59  ;;  %v1729_v19 = vadd.f32 %v1728_v16, %v1716_v13  ;;  %v1704_v21 = vpop.f32.mrf.mxu0  ;;  %v3257_v59 = vld [vmem:[%s4037_s1 + $0x600] sm:$0xff] }
  0xa7   :  { %1980 = vmatpush.bf16.msrb.mxu2 %v3247_v60  ;;  %v1741_v20 = vpop.f32.mrf.mxu3 }
  0xa8   :  { %1967 = vmatpush.bf16.msrb.mxu1 %v3239_v61  ;;  %v1742_v25 = vadd.f32 %v1741_v20, %v1729_v19  ;;  %v1717_v29 = vpop.f32.mrf.mxu1  ;;  %v467_v61 = vld [vmem:[#allocation1] sm:$0xff] }
  0xa9   :  { %1993 = vmatpush.bf16.msrb.mxu3 %v3255_v62  ;;  %v3270_v29 = vld [vmem:[%s4039_s3 + $0x28] sm:$0xff] }
  0xaa   :  { %1955 = vmatpush.bf16.msrb.mxu0 %v3230_v63 }
  0xab   :  { %1981 = vmatpush.bf16.msrb.mxu2 %v3246_v0 }
  0xac   :  { %1968 = vmatpush.bf16.msrb.mxu1 %v3238_v1 }
  0xad   :  { %1994 = vmatpush.bf16.msrb.mxu3 %v3254_v2  ;;  %v1730_v35 = vpop.f32.mrf.mxu2 }
  0xae   :  { %1956 = vmatpush.bf16.msrb.mxu0 %v3229_v4  ;;  %v3267_v35 = vld [vmem:[%s4039_s3 + $0x10] sm:$0xff] }
  0xaf   :  { %1982 = vmatpush.bf16.msrb.mxu2 %v3245_v5  ;;  %v1743_v39 = vpop.f32.mrf.mxu3 }
  0xb0   :  { %1969 = vmatpush.bf16.msrb.mxu1 %v3237_v7 }
  0xb1   :  { %1995 = vmatpush.bf16.msrb.mxu3 %v3253_v8 }
  0xb2   :  { %1957 = vmatpush.bf16.msrb.mxu0 %v3228_v11 }
  0xb3   :  { %1983 = vmatpush.bf16.msrb.mxu2 %v3244_v12 }
  0xb4   :  { %1970 = vmatpush.bf16.msrb.mxu1 %v3236_v14 }
  0xb5   :  { %1996 = vmatpush.bf16.msrb.mxu3 %v3252_v15 }
  0xb6   :  { %1958 = vmatpush.bf16.msrb.mxu0 %v3227_v17 }
  0xb7   :  { %1984 = vmatpush.bf16.msrb.mxu2 %v3243_v18 }
  0xb8   :  { %1971 = vmatpush.bf16.msrb.mxu1 %v3235_v22 }
  0xb9   :  { %1997 = vmatpush.bf16.msrb.mxu3 %v3251_v23  ;;  %v3272_v23 = vld [vmem:[%s4039_s3 + $0x38] sm:$0xff] }
  0xba   :  { %1959 = vmatpush.bf16.msrb.mxu0 %v3226_v24 }
  0xbb   :  { %1985 = vmatpush.bf16.msrb.mxu2 %v3242_v26  ;;  %v3271_v26 = vld [vmem:[%s4039_s3 + $0x30] sm:$0xff] }
  0xbc   :  { %1972 = vmatpush.bf16.msrb.mxu1 %v3234_v33 }
  0xbd   :  { %1998 = vmatpush.bf16.msrb.mxu3 %v3250_v34  ;;  %v3268_v34 = vld [vmem:[%s4039_s3 + $0x18] sm:$0xff] }
  0xbe   :  { %1960 = vmatpush.bf16.msrb.mxu0 %v3225_v36  ;;  %v1754_v45 = vpop.f32.mrf.mxu0  ;;  %v3266_v36 = vld [vmem:[%s4039_s3 + $0x8] sm:$0xff] }
  0xbf   :  { %1986 = vmatpush.bf16.msrb.mxu2 %v3241_v37  ;;  %v1755_v46 = vadd.f32 %v1754_v45, %v1742_v25  ;;  %v3279_v45 = vld [vmem:[%s4041_s5 + $0x30] sm:$0xff] }
  0xc0   :  { %1973 = vmatpush.bf16.msrb.mxu1 %v3233_v40  ;;  %v1767_v47 = vpop.f32.mrf.mxu1 }
  0xc1   :  { %1999 = vmatpush.bf16.msrb.mxu3 %v3249_v41  ;;  %1961 = vmatmul.bf16.vlgmr.msrb.gmra.mxu0 %v461_v27  ;;  %v1768_v48 = vadd.f32 %v1767_v47, %v1755_v46  ;;  %v3280_v41 = vld [vmem:[%s4041_s5 + $0x38] sm:$0xff] }
  0xc2   :  { %2005 = vmatpush.bf16.msra.mxu0 %v3264_v38  ;;  %1987 = vmatmul.bf16.vlgmr.msrb.gmra.mxu2 %v463_v28  ;;  %v3265_v38 = vld [vmem:[%s4039_s3] sm:$0xff] }
  0xc3   :  { %1974 = vmatmul.bf16.vlgmr.msrb.gmra.mxu1 %v462_v30  ;;  %2171 = vmatpush.bf16.msra.mxu2 %v3280_v41 }
  0xc4   :  { %2000 = vmatmul.bf16.vlgmr.msrb.gmra.mxu3 %v464_v31  ;;  %2088 = vmatpush.bf16.msra.mxu1 %v3272_v23  ;;  %v3269_v31 = vld [vmem:[%s4039_s3 + $0x20] sm:$0xff] }
  0xc5   :  { %v1780_v50 = vpop.f32.mrf.mxu2 }
  0xc6   :  { %2006 = vmatpush.bf16.msra.mxu0 %v3263_v42  ;;  %v1781_v51 = vadd.f32 %v1780_v50, %v1768_v48  ;;  %v1756_v54 = vpop.f32.mrf.mxu0  ;;  %v3278_v48 = vld [vmem:[%s4041_s5 + $0x28] sm:$0xff] }
  0xc7   :  { %v1793_v53 = vpop.f32.mrf.mxu3  ;;  %2172 = vmatpush.bf16.msra.mxu2 %v3279_v45 }
  0xc8   :  { %v1794_v55 = vadd.f32 %v1793_v53, %v1781_v51  ;;  %v1769_v56 = vpop.f32.mrf.mxu1  ;;  %2089 = vmatpush.bf16.msra.mxu1 %v3271_v26 }
  0xca   :  { %2007 = vmatpush.bf16.msra.mxu0 %v3262_v43 }
  0xcb   :  { %2173 = vmatpush.bf16.msra.mxu2 %v3278_v48 }
  0xcc   :  { %2090 = vmatpush.bf16.msra.mxu1 %v3270_v29 }
  0xcd   :  { %v1782_v58 = vpop.f32.mrf.mxu2 }
  0xce   :  { %2008 = vmatpush.bf16.msra.mxu0 %v3261_v44 }
  0xcf   :  { %v1795_v60 = vpop.f32.mrf.mxu3 }
  0xd0   :  { %2091 = vmatpush.bf16.msra.mxu1 %v3269_v31 }
  0xd2   :  { %2009 = vmatpush.bf16.msra.mxu0 %v3260_v49 }
  0xd4   :  { %2092 = vmatpush.bf16.msra.mxu1 %v3268_v34 }
  0xd6   :  { %2010 = vmatpush.bf16.msra.mxu0 %v3259_v52  ;;  %v3277_v52 = vld [vmem:[%s4041_s5 + $0x20] sm:$0xff] }
  0xd7   :  { %2174 = vmatpush.bf16.msra.mxu2 %v3277_v52 }
  0xd8   :  { %2093 = vmatpush.bf16.msra.mxu1 %v3267_v35 }
  0xda   :  { %2011 = vmatpush.bf16.msra.mxu0 %v3258_v57  ;;  %v3275_v57 = vld [vmem:[%s4041_s5 + $0x10] sm:$0xff] }
  0xdc   :  { %2094 = vmatpush.bf16.msra.mxu1 %v3266_v36 }
  0xde   :  { %2012 = vmatpush.bf16.msra.mxu0 %v3257_v59  ;;  %v1806_v62 = vpop.f32.mrf.mxu0 }
  0xdf   :  { %v1807_v63 = vadd.f32 %v1806_v62, %v1794_v55  ;;  %v3276_v55 = vld [vmem:[%s4041_s5 + $0x18] sm:$0xff] }
  0xe0   :  { %v1819_v0 = vpop.f32.mrf.mxu1  ;;  %2095 = vmatpush.bf16.msra.mxu1 %v3265_v38  ;;  %2175 = vmatpush.bf16.msra.mxu2 %v3276_v55 }
  0xe1   :  { %2013 = vmatmul.bf16.vlgmr.msra.gmra.mxu0 %v467_v61  ;;  %v1820_v1 = vadd.f32 %v1819_v0, %v1807_v63 }
  0xe4   :  { %2176 = vmatpush.bf16.msra.mxu2 %v3275_v57 }
  0xe5   :  { %v1832_v2 = vpop.f32.mrf.mxu2 }
  0xe6   :  { %v1833_v3 = vadd.f32 %v1832_v2, %v1820_v1  ;;  %v1808_v5 = vpop.f32.mrf.mxu0  ;;  %v3274_v1 = vld [vmem:[%s4041_s5 + $0x8] sm:$0xff]  ;;  %v3273_v2 = vld [vmem:[%s4041_s5] sm:$0xff]  ;;  %s2192_s5 = sshll.u32 %s4043_s7, 4  ;;  %s2193_s5 = int_to_ptr.hbm [resolvable:$true] %s2192_s5 }
  0xe7   :  { %v1845_v4 = vpop.f32.mrf.mxu3 }
  0xe8   :  { %v1846_v6 = vadd.f32 %v1845_v4, %v1833_v3  ;;  %v1821_v7 = vpop.f32.mrf.mxu1  ;;  %2177 = vmatpush.bf16.msra.mxu2 %v3274_v1  ;;  %v3283_v3 = vld [vmem:[%s4040_s4] ss:$0 sm:$0xff] }
  0xec   :  { %2178 = vmatpush.bf16.msra.mxu2 %v3273_v2 }
  0xed   :  { %v1834_v8 = vpop.f32.mrf.mxu2 }
  0xef   :  { %v1847_v9 = vpop.f32.mrf.mxu3 }
  0xf0   :  { %v3284_v9 = vld [vmem:[%s4042_s6] ss:$0 sm:$0xff] }
  0xfe   :  { %v1858_v10 = vpop.f32.mrf.mxu0 }
  0xff   :  { %v1859_v11 = vadd.f32 %v1858_v10, %v1846_v6 }
 0x100   :  { %v1871_v12 = vpop.f32.mrf.mxu1 }
 0x101   :  { %v1872_v13 = vadd.f32 %v1871_v12, %v1859_v11 }
 0x105   :  { %v1884_v14 = vpop.f32.mrf.mxu2 }
 0x106   :  { %v1885_v15 = vadd.f32 %v1884_v14, %v1872_v13  ;;  %v1860_v17 = vpop.f32.mrf.mxu0 }
 0x107   :  { %v1897_v16 = vpop.f32.mrf.mxu3 }
 0x108   :  { %v1898_v18 = vadd.f32 %v1897_v16, %v1885_v15  ;;  %v1873_v19 = vpop.f32.mrf.mxu1 }
 0x10d   :  { %v1886_v20 = vpop.f32.mrf.mxu2 }
 0x10f   :  { %v1899_v21 = vpop.f32.mrf.mxu3 }
 0x11e   :  { %v1910_v22 = vpop.f32.mrf.mxu0 }
 0x11f   :  { %v1911_v42 = vadd.f32 %v1910_v22, %v1898_v18 }
 0x120   :  { %v1923_v24 = vpop.f32.mrf.mxu1 }
 0x121   :  { %v1924_v47 = vadd.f32 %v1923_v24, %v1911_v42 }
 0x125   :  { %v1936_v25 = vpop.f32.mrf.mxu2 }
 0x126   :  { %v1912_v28 = vpop.f32.mrf.mxu0  ;;  %v1937_v49 = vadd.f32 %v1936_v25, %v1924_v47 }
 0x127   :  { %v1949_v27 = vpop.f32.mrf.mxu3 }
 0x128   :  { %v1925_v30 = vpop.f32.mrf.mxu1  ;;  %v1950_v53 = vadd.f32 %v1949_v27, %v1937_v49 }
 0x12d   :  { %v1938_v32 = vpop.f32.mrf.mxu2 }
 0x12f   :  { %v1951_v33 = vpop.f32.mrf.mxu3 }
 0x13e   :  { %v1962_v37 = vpop.f32.mrf.mxu0 }
 0x13f   :  { %v1963_v54 = vadd.f32 %v1962_v37, %v1950_v53 }
 0x140   :  { %v1975_v39 = vpop.f32.mrf.mxu1 }
 0x141   :  { %v1976_v56 = vadd.f32 %v1975_v39, %v1963_v54 }
 0x145   :  { %v1988_v40 = vpop.f32.mrf.mxu2 }
 0x146   :  { %v1964_v44 = vpop.f32.mrf.mxu0  ;;  %v1989_v58 = vadd.f32 %v1988_v40, %v1976_v56 }
 0x147   :  { %v2001_v43 = vpop.f32.mrf.mxu3 }
 0x148   :  { %v1977_v46 = vpop.f32.mrf.mxu1  ;;  %v2002_v59 = vadd.f32 %v2001_v43, %v1989_v58 }
 0x14d   :  { %v1990_v50 = vpop.f32.mrf.mxu2 }
 0x14f   :  { %v2003_v51 = vpop.f32.mrf.mxu3 }
 0x15e   :  { %v2014_v60 = vpop.f32.mrf.mxu0 }
 0x15f   :  { %v2015_v61 = vadd.f32 %v2014_v60, %v2002_v59 }
 0x161   :  { %v2018_v62 = vmax.f32 %v2015_v61, 0.0 }
 0x163   :  { %v2019_v63 = vpack.c.bf16 %v2018_v62, %v2018_v62 }
 0x165   :  { %2096 = vmatmul.bf16.vlgmr.msra.gmra.mxu1 %v2019_v63 }
 0x166   :  { %v2016_v0 = vpop.f32.mrf.mxu0 }
 0x1e2   :  { %v2097_v4 = vpop.f32.mrf.mxu1 }
 0x1e3   :  { %v2098_v5 = vadd.f32 %v3283_v3, %v2097_v4 }
 0x1e5   :  { %v2101_v6 = vmax.f32 %v2098_v5, 0.0 }
 0x1e7   :  { %v2102_v7 = vpack.c.bf16 %v2101_v6, %v2101_v6 }
 0x1e9   :  { %2179 = vmatmul.bf16.vlgmr.msra.gmra.mxu2 %v2102_v7 }
 0x1ea   :  { %v2099_v8 = vpop.f32.mrf.mxu1 }
 0x26c   :  { %v2180_v10 = vpop.f32.mrf.mxu2 }
 0x26d   :  { %v2181_v11 = vadd.f32 %v3284_v9, %v2180_v10 }
 0x26f   :  { %2184 = vst [vmem:[#allocation2] sm:$0x3] %v2181_v11 }
 0x270   :  { %2195 = dma.vmem_to_hbm [thread:$0]  %s2191_s24, 32, %s2193_s5, [#allocation3]  }
 0x274   :  { %v2182_v12 = vpop.f32.mrf.mxu2 }
 0x275   :  { %3309 = dma.done.wait [#allocation3], 32  }
 0x276   :  { %3310 = vsyncadd [#allocation3], 4294967264 }
 0x277   :  { %2200 = vsyncpa [#allocation3], 1 }

</bundles_post_ra>
